<compile_context>
chip_gen: v5e
topology: v5e:2x2
jax: 0.10.0
libtpu: 0.0.40
codegen_flags: <defaults>
</compile_context>

<pallas_src>
import functools

import jax
import jax.numpy as jnp
from jax import lax
from jax.experimental import pallas as pl
from jax.experimental.pallas import tpu as pltpu


def fused_conv1x1_sigmoid_kernel(x_ref, w_ref, dist_ref, o_ref, y_ref, *,
                                 num_layers):
    # x_ref:    (1, C+1, Mt) zero-padded input; channel C is constant 1 (bias fold)
    # w_ref:    (C, C+1)     [conv_weight | bias]
    # dist_ref: (1, Mt)      int32 distance of each pixel to the padded border,
    #                        -1 on the lane-padding tail
    # o_ref:    (1, C, Mt)   output after num_layers conv+sigmoid applications
    # y_ref:    (C+1, Mt)    f32 VMEM scratch: rows 0..C-1 activations, row C == 1
    C = w_ref.shape[0]

    w_ext = w_ref[...]                           # (C, C+1), stays resident
    dist = dist_ref[...]                         # (1, Mt)

    # Working buffer: activations + the constant ones row (written once here,
    # never rewritten -- it carries the bias through every matmul).
    y_ref[...] = x_ref[0].astype(jnp.float32)

    def body(i, carry):
        # 1x1 conv + bias as a single MXU contraction: [W | b] @ [y ; 1].
        z = jnp.dot(w_ext, y_ref[...], preferred_element_type=jnp.float32)
        # Exact sigmoid: one EUP tanh + two cheap VALU ops.
        s = 0.5 * jnp.tanh(0.5 * z) + 0.5
        # Layer i's output only exists on the central (H + 2*(i+1)) square.
        # Everything outside stays exact 0, which (1x1 kernel => pointwise) is
        # exactly the zero padding the next layer must see. Lane-padding tail
        # (dist == -1) never activates.
        active = dist >= (num_layers - 1 - i)    # (1, Mt), broadcasts over C
        y_ref[pl.ds(0, C), :] = jnp.where(active, s, 0.0)
        return carry

    lax.fori_loop(0, num_layers, body, 0, unroll=True)
    o_ref[0] = y_ref[pl.ds(0, C), :].astype(o_ref.dtype)


def fused_forward(x_nchw, w_oc_ic, b_oc, *, num_layers=7):
    """num_layers x [Conv2d(C,C,1,stride=1,padding=1) -> sigmoid], shared weights.

    Output spatial size is (H + 2*num_layers, W + 2*num_layers), matching the
    PyTorch module. Works directly in NCHW (channel-major) layout.
    """
    N, C, H, W = x_nchw.shape
    P = num_layers
    Hp, Wp = H + 2 * P, W + 2 * P
    Mt = Hp * Wp
    Mt_pad = ((Mt + 127) // 128) * 128           # lane-dense pixel axis

    # One-time layout glue for the whole stack (not per layer): NCHW -> channel-
    # major (C, pixels) with pixels on lanes, plus the constant ones channel.
    xp = jnp.pad(x_nchw, ((0, 0), (0, 0), (P, P), (P, P))).reshape(N, C, Mt)
    xp = jnp.pad(xp, ((0, 0), (0, 0), (0, Mt_pad - Mt)))
    ones_ch = jnp.ones((N, 1, Mt_pad), x_nchw.dtype)
    xp_ext = jnp.concatenate([xp, ones_ch], axis=1)            # (N, C+1, Mt_pad)

    # Distance of every pixel to the border of the fully padded (Hp, Wp) buffer;
    # -1 on the lane-padding tail so those lanes never become active.
    row = lax.broadcasted_iota(jnp.int32, (Hp, Wp), 0)
    col = lax.broadcasted_iota(jnp.int32, (Hp, Wp), 1)
    dist = jnp.minimum(jnp.minimum(row, col),
                       jnp.minimum(Hp - 1 - row, Wp - 1 - col)).reshape(1, Mt)
    dist = jnp.pad(dist, ((0, 0), (0, Mt_pad - Mt)), constant_values=-1)

    # Bias folded into the weight: (C, C+1) = [W | b].
    w_ext = jnp.concatenate([w_oc_ic, b_oc.reshape(C, 1)], axis=1)

    kernel = functools.partial(fused_conv1x1_sigmoid_kernel, num_layers=P)

    out = pl.pallas_call(
        kernel,
        out_shape=jax.ShapeDtypeStruct((N, C, Mt_pad), x_nchw.dtype),
        grid=(N,),
        in_specs=[
            pl.BlockSpec((1, C + 1, Mt_pad), lambda n: (n, 0, 0)),
            pl.BlockSpec((C, C + 1), lambda n: (0, 0)),
            pl.BlockSpec((1, Mt_pad), lambda n: (0, 0)),
        ],
        out_specs=pl.BlockSpec((1, C, Mt_pad), lambda n: (n, 0, 0)),
        scratch_shapes=[pltpu.VMEM((C + 1, Mt_pad), jnp.float32)],
        compiler_params=pltpu.CompilerParams(
            # Batch axis is independent; harmless single iteration at N=1.
            dimension_semantics=("parallel",),
        ),
    )(xp_ext, w_ext, dist)

    # TODO(synk): if N or H*W grows, switch to a lane-chunked grid over a
    # (C, N*Mt_pad) layout so each step does a wide matmul and the chunk axis
    # can shard across v7x's two TensorCores.
    return out[..., :Mt].reshape(N, C, Hp, Wp)


class PallasModel:
    """JAX/Pallas equivalent of the PyTorch Model: Conv2d(10,10,1,padding=1)
    then sigmoid, applied 7 times with shared weights.

    Weight orientation: (Cout, Cin), i.e. PyTorch's Conv2d weight of shape
    (Cout, Cin, 1, 1) with the trailing 1x1 squeezed -- no transpose needed.
    """

    def __init__(self, key, channels=10, dtype=jnp.float32):
        kw, kb = jax.random.split(key)
        fan_in = channels  # 1x1 kernel -> fan_in = Cin
        bound = 1.0 / float(fan_in) ** 0.5
        self.w = jax.random.uniform(kw, (channels, channels), dtype, -bound, bound)
        self.b = jax.random.uniform(kb, (channels,), dtype, -bound, bound)

    def __call__(self, x_nchw):
        return fused_forward(x_nchw, self.w, self.b, num_layers=7)


def _reference_forward(x, w, b, num_layers=7):
    # Pure-JAX reference: per-layer pad + channel matmul + exact sigmoid.
    y = x
    for _ in range(num_layers):
        yp = jnp.pad(y, ((0, 0), (0, 0), (1, 1), (1, 1)))
        z = jnp.einsum('oc,nchw->nohw', w, yp) + b[None, :, None, None]
        y = jax.nn.sigmoid(z)
    return y


if __name__ == "__main__":
    key = jax.random.PRNGKey(0)
    k_param, k_x = jax.random.split(key)

    model = PallasModel(k_param, channels=10)

    # Small input consistent with the module: batch=1, channels=10, spatial=16.
    x = jax.random.normal(k_x, (1, 10, 16, 16), dtype=jnp.float32)

    out = jax.jit(model.__call__)(x)
    out = jax.block_until_ready(out)

    # 7 convs with padding=1 and 1x1 kernels: 16 -> 16 + 2*7 = 30
    assert out.shape == (1, 10, 30, 30), out.shape
    assert bool(jnp.all(jnp.isfinite(out)))

    # Numerical check vs pure-JAX reference (exact sigmoid now; remaining delta
    # is only matmul pass-count / rounding).
    ref = _reference_forward(x, model.w, model.b, num_layers=7)
    max_err = float(jnp.max(jnp.abs(out - ref)))
    assert max_err < 1e-2, max_err

    print("KERNEL_OK")
</pallas_src>

<mosaic_0001>
module attributes {stable_mosaic.version = 11 : i64} {
  func.func @fused_conv1x1_sigmoid_kernel(%arg0: i32, %arg1: memref<1x11x1024xf32, #tpu.memory_space<vmem>>, %arg2: memref<10x11xf32, #tpu.memory_space<vmem>>, %arg3: memref<1x1024xi32, #tpu.memory_space<vmem>>, %arg4: memref<1x10x1024xf32, #tpu.memory_space<vmem>>, %arg5: memref<11x1024xf32, #tpu.memory_space<vmem>>) attributes {dimension_semantics = [#tpu.dimension_semantics<parallel>], iteration_bounds = array<i64: 1>, scalar_prefetch = 0 : i64, scratch_operands = 1 : i64, tpu.core_type = #tpu.core_type<tc>, window_params = [{transform_indices = @transform_0, window_bounds = array<i64: 1, 11, 1024>}, {pipeline_mode = #tpu.pipeline_mode<synchronous>, transform_indices = @transform_1, window_bounds = array<i64: 10, 11>}, {pipeline_mode = #tpu.pipeline_mode<synchronous>, transform_indices = @transform_2, window_bounds = array<i64: 1, 1024>}, {transform_indices = @transform_3, window_bounds = array<i64: 1, 10, 1024>}]} {
    %c0 = arith.constant 0 : index
    %c0_0 = arith.constant 0 : index
    %0 = vector.load %arg2[%c0, %c0_0] : memref<10x11xf32, #tpu.memory_space<vmem>>, vector<10x11xf32>
    %c0_1 = arith.constant 0 : index
    %c0_2 = arith.constant 0 : index
    %1 = vector.load %arg3[%c0_1, %c0_2] : memref<1x1024xi32, #tpu.memory_space<vmem>>, vector<1x1024xi32>
    %c0_3 = arith.constant 0 : index
    %c0_4 = arith.constant 0 : index
    %c0_5 = arith.constant 0 : index
    %2 = vector.load %arg1[%c0_3, %c0_4, %c0_5] : memref<1x11x1024xf32, #tpu.memory_space<vmem>>, vector<1x11x1024xf32>
    %3 = vector.shape_cast %2 : vector<1x11x1024xf32> to vector<11x1024xf32>
    %c0_6 = arith.constant 0 : index
    %c0_7 = arith.constant 0 : index
    %4 = vector.load %arg5[%c0_6, %c0_7] : memref<11x1024xf32, #tpu.memory_space<vmem>>, vector<11x1024xf32>
    tpu.vector_store %arg5[%c0_6, %c0_7], %3 {strides = array<i32>} : memref<11x1024xf32, #tpu.memory_space<vmem>>, vector<11x1024xf32>,
    %c0_i32 = arith.constant 0 : i32
    %c0_8 = arith.constant 0 : index
    %c0_9 = arith.constant 0 : index
    %5 = vector.load %arg5[%c0_8, %c0_9] : memref<11x1024xf32, #tpu.memory_space<vmem>>, vector<11x1024xf32>
    %cst = arith.constant dense<0.000000e+00> : vector<10x1024xf32>
    %6 = tpu.matmul %0, %5, %cst {dimension_numbers = #tpu.dot_dimension_numbers<[1], [0], [0], [1], [0, 0, 1, 1], [], []>} : vector<10x11xf32>, vector<11x1024xf32>, vector<10x1024xf32> -> vector<10x1024xf32>
    %cst_10 = arith.constant 5.000000e-01 : f32
    %7 = vector.broadcast %cst_10 : f32 to vector<10x1024xf32>
    %8 = arith.mulf %7, %6 : vector<10x1024xf32>
    %9 = math.tanh %8 : vector<10x1024xf32>
    %cst_11 = arith.constant 5.000000e-01 : f32
    %10 = vector.broadcast %cst_11 : f32 to vector<10x1024xf32>
    %11 = arith.mulf %10, %9 : vector<10x1024xf32>
    %cst_12 = arith.constant 5.000000e-01 : f32
    %12 = vector.broadcast %cst_12 : f32 to vector<10x1024xf32>
    %13 = arith.addf %11, %12 : vector<10x1024xf32>
    %c6_i32 = arith.constant 6 : i32
    %14 = arith.subi %c6_i32, %c0_i32 : i32
    %15 = vector.broadcast %14 : i32 to vector<1x1024xi32>
    %16 = arith.cmpi sge, %1, %15 : vector<1x1024xi32>
    %cst_13 = arith.constant 0.000000e+00 : f32
    %17 = vector.shape_cast %16 : vector<1x1024xi1> to vector<1x1024xi1>
    %18 = vector.broadcast %17 : vector<1x1024xi1> to vector<10x1024xi1>
    %19 = vector.broadcast %cst_13 : f32 to vector<10x1024xf32>
    %20 = arith.select %18, %13, %19 : vector<10x1024xi1>, vector<10x1024xf32>
    %c0_14 = arith.constant 0 : index
    %c0_15 = arith.constant 0 : index
    %21 = vector.load %arg5[%c0_14, %c0_15] : memref<11x1024xf32, #tpu.memory_space<vmem>>, vector<10x1024xf32>
    tpu.vector_store %arg5[%c0_14, %c0_15], %20 {strides = array<i32>} : memref<11x1024xf32, #tpu.memory_space<vmem>>, vector<10x1024xf32>,
    %c1_i32 = arith.constant 1 : i32
    %c0_16 = arith.constant 0 : index
    %c0_17 = arith.constant 0 : index
    %22 = vector.load %arg5[%c0_16, %c0_17] : memref<11x1024xf32, #tpu.memory_space<vmem>>, vector<11x1024xf32>
    %cst_18 = arith.constant dense<0.000000e+00> : vector<10x1024xf32>
    %23 = tpu.matmul %0, %22, %cst_18 {dimension_numbers = #tpu.dot_dimension_numbers<[1], [0], [0], [1], [0, 0, 1, 1], [], []>} : vector<10x11xf32>, vector<11x1024xf32>, vector<10x1024xf32> -> vector<10x1024xf32>
    %cst_19 = arith.constant 5.000000e-01 : f32
    %24 = vector.broadcast %cst_19 : f32 to vector<10x1024xf32>
    %25 = arith.mulf %24, %23 : vector<10x1024xf32>
    %26 = math.tanh %25 : vector<10x1024xf32>
    %cst_20 = arith.constant 5.000000e-01 : f32
    %27 = vector.broadcast %cst_20 : f32 to vector<10x1024xf32>
    %28 = arith.mulf %27, %26 : vector<10x1024xf32>
    %cst_21 = arith.constant 5.000000e-01 : f32
    %29 = vector.broadcast %cst_21 : f32 to vector<10x1024xf32>
    %30 = arith.addf %28, %29 : vector<10x1024xf32>
    %c6_i32_22 = arith.constant 6 : i32
    %31 = arith.subi %c6_i32_22, %c1_i32 : i32
    %32 = vector.broadcast %31 : i32 to vector<1x1024xi32>
    %33 = arith.cmpi sge, %1, %32 : vector<1x1024xi32>
    %cst_23 = arith.constant 0.000000e+00 : f32
    %34 = vector.shape_cast %33 : vector<1x1024xi1> to vector<1x1024xi1>
    %35 = vector.broadcast %34 : vector<1x1024xi1> to vector<10x1024xi1>
    %36 = vector.broadcast %cst_23 : f32 to vector<10x1024xf32>
    %37 = arith.select %35, %30, %36 : vector<10x1024xi1>, vector<10x1024xf32>
    %c0_24 = arith.constant 0 : index
    %c0_25 = arith.constant 0 : index
    %38 = vector.load %arg5[%c0_24, %c0_25] : memref<11x1024xf32, #tpu.memory_space<vmem>>, vector<10x1024xf32>
    tpu.vector_store %arg5[%c0_24, %c0_25], %37 {strides = array<i32>} : memref<11x1024xf32, #tpu.memory_space<vmem>>, vector<10x1024xf32>,
    %c2_i32 = arith.constant 2 : i32
    %c0_26 = arith.constant 0 : index
    %c0_27 = arith.constant 0 : index
    %39 = vector.load %arg5[%c0_26, %c0_27] : memref<11x1024xf32, #tpu.memory_space<vmem>>, vector<11x1024xf32>
    %cst_28 = arith.constant dense<0.000000e+00> : vector<10x1024xf32>
    %40 = tpu.matmul %0, %39, %cst_28 {dimension_numbers = #tpu.dot_dimension_numbers<[1], [0], [0], [1], [0, 0, 1, 1], [], []>} : vector<10x11xf32>, vector<11x1024xf32>, vector<10x1024xf32> -> vector<10x1024xf32>
    %cst_29 = arith.constant 5.000000e-01 : f32
    %41 = vector.broadcast %cst_29 : f32 to vector<10x1024xf32>
    %42 = arith.mulf %41, %40 : vector<10x1024xf32>
    %43 = math.tanh %42 : vector<10x1024xf32>
    %cst_30 = arith.constant 5.000000e-01 : f32
    %44 = vector.broadcast %cst_30 : f32 to vector<10x1024xf32>
    %45 = arith.mulf %44, %43 : vector<10x1024xf32>
    %cst_31 = arith.constant 5.000000e-01 : f32
    %46 = vector.broadcast %cst_31 : f32 to vector<10x1024xf32>
    %47 = arith.addf %45, %46 : vector<10x1024xf32>
    %c6_i32_32 = arith.constant 6 : i32
    %48 = arith.subi %c6_i32_32, %c2_i32 : i32
    %49 = vector.broadcast %48 : i32 to vector<1x1024xi32>
    %50 = arith.cmpi sge, %1, %49 : vector<1x1024xi32>
    %cst_33 = arith.constant 0.000000e+00 : f32
    %51 = vector.shape_cast %50 : vector<1x1024xi1> to vector<1x1024xi1>
    %52 = vector.broadcast %51 : vector<1x1024xi1> to vector<10x1024xi1>
    %53 = vector.broadcast %cst_33 : f32 to vector<10x1024xf32>
    %54 = arith.select %52, %47, %53 : vector<10x1024xi1>, vector<10x1024xf32>
    %c0_34 = arith.constant 0 : index
    %c0_35 = arith.constant 0 : index
    %55 = vector.load %arg5[%c0_34, %c0_35] : memref<11x1024xf32, #tpu.memory_space<vmem>>, vector<10x1024xf32>
    tpu.vector_store %arg5[%c0_34, %c0_35], %54 {strides = array<i32>} : memref<11x1024xf32, #tpu.memory_space<vmem>>, vector<10x1024xf32>,
    %c3_i32 = arith.constant 3 : i32
    %c0_36 = arith.constant 0 : index
    %c0_37 = arith.constant 0 : index
    %56 = vector.load %arg5[%c0_36, %c0_37] : memref<11x1024xf32, #tpu.memory_space<vmem>>, vector<11x1024xf32>
    %cst_38 = arith.constant dense<0.000000e+00> : vector<10x1024xf32>
    %57 = tpu.matmul %0, %56, %cst_38 {dimension_numbers = #tpu.dot_dimension_numbers<[1], [0], [0], [1], [0, 0, 1, 1], [], []>} : vector<10x11xf32>, vector<11x1024xf32>, vector<10x1024xf32> -> vector<10x1024xf32>
    %cst_39 = arith.constant 5.000000e-01 : f32
    %58 = vector.broadcast %cst_39 : f32 to vector<10x1024xf32>
    %59 = arith.mulf %58, %57 : vector<10x1024xf32>
    %60 = math.tanh %59 : vector<10x1024xf32>
    %cst_40 = arith.constant 5.000000e-01 : f32
    %61 = vector.broadcast %cst_40 : f32 to vector<10x1024xf32>
    %62 = arith.mulf %61, %60 : vector<10x1024xf32>
    %cst_41 = arith.constant 5.000000e-01 : f32
    %63 = vector.broadcast %cst_41 : f32 to vector<10x1024xf32>
    %64 = arith.addf %62, %63 : vector<10x1024xf32>
    %c6_i32_42 = arith.constant 6 : i32
    %65 = arith.subi %c6_i32_42, %c3_i32 : i32
    %66 = vector.broadcast %65 : i32 to vector<1x1024xi32>
    %67 = arith.cmpi sge, %1, %66 : vector<1x1024xi32>
    %cst_43 = arith.constant 0.000000e+00 : f32
    %68 = vector.shape_cast %67 : vector<1x1024xi1> to vector<1x1024xi1>
    %69 = vector.broadcast %68 : vector<1x1024xi1> to vector<10x1024xi1>
    %70 = vector.broadcast %cst_43 : f32 to vector<10x1024xf32>
    %71 = arith.select %69, %64, %70 : vector<10x1024xi1>, vector<10x1024xf32>
    %c0_44 = arith.constant 0 : index
    %c0_45 = arith.constant 0 : index
    %72 = vector.load %arg5[%c0_44, %c0_45] : memref<11x1024xf32, #tpu.memory_space<vmem>>, vector<10x1024xf32>
    tpu.vector_store %arg5[%c0_44, %c0_45], %71 {strides = array<i32>} : memref<11x1024xf32, #tpu.memory_space<vmem>>, vector<10x1024xf32>,
    %c4_i32 = arith.constant 4 : i32
    %c0_46 = arith.constant 0 : index
    %c0_47 = arith.constant 0 : index
    %73 = vector.load %arg5[%c0_46, %c0_47] : memref<11x1024xf32, #tpu.memory_space<vmem>>, vector<11x1024xf32>
    %cst_48 = arith.constant dense<0.000000e+00> : vector<10x1024xf32>
    %74 = tpu.matmul %0, %73, %cst_48 {dimension_numbers = #tpu.dot_dimension_numbers<[1], [0], [0], [1], [0, 0, 1, 1], [], []>} : vector<10x11xf32>, vector<11x1024xf32>, vector<10x1024xf32> -> vector<10x1024xf32>
    %cst_49 = arith.constant 5.000000e-01 : f32
    %75 = vector.broadcast %cst_49 : f32 to vector<10x1024xf32>
    %76 = arith.mulf %75, %74 : vector<10x1024xf32>
    %77 = math.tanh %76 : vector<10x1024xf32>
    %cst_50 = arith.constant 5.000000e-01 : f32
    %78 = vector.broadcast %cst_50 : f32 to vector<10x1024xf32>
    %79 = arith.mulf %78, %77 : vector<10x1024xf32>
    %cst_51 = arith.constant 5.000000e-01 : f32
    %80 = vector.broadcast %cst_51 : f32 to vector<10x1024xf32>
    %81 = arith.addf %79, %80 : vector<10x1024xf32>
    %c6_i32_52 = arith.constant 6 : i32
    %82 = arith.subi %c6_i32_52, %c4_i32 : i32
    %83 = vector.broadcast %82 : i32 to vector<1x1024xi32>
    %84 = arith.cmpi sge, %1, %83 : vector<1x1024xi32>
    %cst_53 = arith.constant 0.000000e+00 : f32
    %85 = vector.shape_cast %84 : vector<1x1024xi1> to vector<1x1024xi1>
    %86 = vector.broadcast %85 : vector<1x1024xi1> to vector<10x1024xi1>
    %87 = vector.broadcast %cst_53 : f32 to vector<10x1024xf32>
    %88 = arith.select %86, %81, %87 : vector<10x1024xi1>, vector<10x1024xf32>
    %c0_54 = arith.constant 0 : index
    %c0_55 = arith.constant 0 : index
    %89 = vector.load %arg5[%c0_54, %c0_55] : memref<11x1024xf32, #tpu.memory_space<vmem>>, vector<10x1024xf32>
    tpu.vector_store %arg5[%c0_54, %c0_55], %88 {strides = array<i32>} : memref<11x1024xf32, #tpu.memory_space<vmem>>, vector<10x1024xf32>,
    %c5_i32 = arith.constant 5 : i32
    %c0_56 = arith.constant 0 : index
    %c0_57 = arith.constant 0 : index
    %90 = vector.load %arg5[%c0_56, %c0_57] : memref<11x1024xf32, #tpu.memory_space<vmem>>, vector<11x1024xf32>
    %cst_58 = arith.constant dense<0.000000e+00> : vector<10x1024xf32>
    %91 = tpu.matmul %0, %90, %cst_58 {dimension_numbers = #tpu.dot_dimension_numbers<[1], [0], [0], [1], [0, 0, 1, 1], [], []>} : vector<10x11xf32>, vector<11x1024xf32>, vector<10x1024xf32> -> vector<10x1024xf32>
    %cst_59 = arith.constant 5.000000e-01 : f32
    %92 = vector.broadcast %cst_59 : f32 to vector<10x1024xf32>
    %93 = arith.mulf %92, %91 : vector<10x1024xf32>
    %94 = math.tanh %93 : vector<10x1024xf32>
    %cst_60 = arith.constant 5.000000e-01 : f32
    %95 = vector.broadcast %cst_60 : f32 to vector<10x1024xf32>
    %96 = arith.mulf %95, %94 : vector<10x1024xf32>
    %cst_61 = arith.constant 5.000000e-01 : f32
    %97 = vector.broadcast %cst_61 : f32 to vector<10x1024xf32>
    %98 = arith.addf %96, %97 : vector<10x1024xf32>
    %c6_i32_62 = arith.constant 6 : i32
    %99 = arith.subi %c6_i32_62, %c5_i32 : i32
    %100 = vector.broadcast %99 : i32 to vector<1x1024xi32>
    %101 = arith.cmpi sge, %1, %100 : vector<1x1024xi32>
    %cst_63 = arith.constant 0.000000e+00 : f32
    %102 = vector.shape_cast %101 : vector<1x1024xi1> to vector<1x1024xi1>
    %103 = vector.broadcast %102 : vector<1x1024xi1> to vector<10x1024xi1>
    %104 = vector.broadcast %cst_63 : f32 to vector<10x1024xf32>
    %105 = arith.select %103, %98, %104 : vector<10x1024xi1>, vector<10x1024xf32>
    %c0_64 = arith.constant 0 : index
    %c0_65 = arith.constant 0 : index
    %106 = vector.load %arg5[%c0_64, %c0_65] : memref<11x1024xf32, #tpu.memory_space<vmem>>, vector<10x1024xf32>
    tpu.vector_store %arg5[%c0_64, %c0_65], %105 {strides = array<i32>} : memref<11x1024xf32, #tpu.memory_space<vmem>>, vector<10x1024xf32>,
    %c6_i32_66 = arith.constant 6 : i32
    %c0_67 = arith.constant 0 : index
    %c0_68 = arith.constant 0 : index
    %107 = vector.load %arg5[%c0_67, %c0_68] : memref<11x1024xf32, #tpu.memory_space<vmem>>, vector<11x1024xf32>
    %cst_69 = arith.constant dense<0.000000e+00> : vector<10x1024xf32>
    %108 = tpu.matmul %0, %107, %cst_69 {dimension_numbers = #tpu.dot_dimension_numbers<[1], [0], [0], [1], [0, 0, 1, 1], [], []>} : vector<10x11xf32>, vector<11x1024xf32>, vector<10x1024xf32> -> vector<10x1024xf32>
    %cst_70 = arith.constant 5.000000e-01 : f32
    %109 = vector.broadcast %cst_70 : f32 to vector<10x1024xf32>
    %110 = arith.mulf %109, %108 : vector<10x1024xf32>
    %111 = math.tanh %110 : vector<10x1024xf32>
    %cst_71 = arith.constant 5.000000e-01 : f32
    %112 = vector.broadcast %cst_71 : f32 to vector<10x1024xf32>
    %113 = arith.mulf %112, %111 : vector<10x1024xf32>
    %cst_72 = arith.constant 5.000000e-01 : f32
    %114 = vector.broadcast %cst_72 : f32 to vector<10x1024xf32>
    %115 = arith.addf %113, %114 : vector<10x1024xf32>
    %c6_i32_73 = arith.constant 6 : i32
    %116 = arith.subi %c6_i32_73, %c6_i32_66 : i32
    %117 = vector.broadcast %116 : i32 to vector<1x1024xi32>
    %118 = arith.cmpi sge, %1, %117 : vector<1x1024xi32>
    %cst_74 = arith.constant 0.000000e+00 : f32
    %119 = vector.shape_cast %118 : vector<1x1024xi1> to vector<1x1024xi1>
    %120 = vector.broadcast %119 : vector<1x1024xi1> to vector<10x1024xi1>
    %121 = vector.broadcast %cst_74 : f32 to vector<10x1024xf32>
    %122 = arith.select %120, %115, %121 : vector<10x1024xi1>, vector<10x1024xf32>
    %c0_75 = arith.constant 0 : index
    %c0_76 = arith.constant 0 : index
    %123 = vector.load %arg5[%c0_75, %c0_76] : memref<11x1024xf32, #tpu.memory_space<vmem>>, vector<10x1024xf32>
    tpu.vector_store %arg5[%c0_75, %c0_76], %122 {strides = array<i32>} : memref<11x1024xf32, #tpu.memory_space<vmem>>, vector<10x1024xf32>,
    %c7_i32 = arith.constant 7 : i32
    %c0_77 = arith.constant 0 : index
    %c0_78 = arith.constant 0 : index
    %124 = vector.load %arg5[%c0_77, %c0_78] : memref<11x1024xf32, #tpu.memory_space<vmem>>, vector<10x1024xf32>
    %c0_79 = arith.constant 0 : index
    %c0_80 = arith.constant 0 : index
    %c0_81 = arith.constant 0 : index
    %125 = vector.load %arg4[%c0_79, %c0_80, %c0_81] : memref<1x10x1024xf32, #tpu.memory_space<vmem>>, vector<1x10x1024xf32>
    %126 = vector.shape_cast %125 : vector<1x10x1024xf32> to vector<10x1024xf32>
    %127 = vector.shape_cast %124 : vector<10x1024xf32> to vector<1x10x1024xf32>
    tpu.vector_store %arg4[%c0_79, %c0_80, %c0_81], %127 {strides = array<i32>} : memref<1x10x1024xf32, #tpu.memory_space<vmem>>, vector<1x10x1024xf32>,
    return
  }
  func.func @transform_0(%arg0: i32) -> (i32, i32, i32) {
    %c0_i32 = arith.constant 0 : i32
    %c0_i32_0 = arith.constant 0 : i32
    %c0_i32_1 = arith.constant 0 : i32
    return %arg0, %c0_i32, %c0_i32_0 : i32, i32, i32
  }
  func.func @transform_1(%arg0: i32) -> (i32, i32) {
    %c0_i32 = arith.constant 0 : i32
    %c0_i32_0 = arith.constant 0 : i32
    %c0_i32_1 = arith.constant 0 : i32
    return %c0_i32, %c0_i32_0 : i32, i32
  }
  func.func @transform_2(%arg0: i32) -> (i32, i32) {
    %c0_i32 = arith.constant 0 : i32
    %c0_i32_0 = arith.constant 0 : i32
    %c0_i32_1 = arith.constant 0 : i32
    return %c0_i32, %c0_i32_0 : i32, i32
  }
  func.func @transform_3(%arg0: i32) -> (i32, i32, i32) {
    %c0_i32 = arith.constant 0 : i32
    %c0_i32_0 = arith.constant 0 : i32
    %c0_i32_1 = arith.constant 0 : i32
    return %arg0, %c0_i32, %c0_i32_0 : i32, i32, i32
  }
}

</mosaic_0001>

<bundles_post_ra>
// kernel: a_call__.1
= control target key start
LH: loop header
LB: loop body
LE: loop exit
PB: predicated region body
PF: predicated region fallthrough
CT: control target
= control target key end

     0   :  { %vm72_vm0 = vcmask 1042432   ;;  %vm65_vm1 = vcmask 89088   ;;  %v2906_v43 = vmov 0   ;;  %s3861_s0 = inlined_call_operand.vmem [shape: f32[1,11,1024], index: 0, kind: input, shape index: {}]   ;;  %s3862_s1 = inlined_call_operand.vmem [shape: f32[10,11], index: 1, kind: input, shape index: {}]   ;;  %s3863_s2 = inlined_call_operand.vmem [shape: s32[1,1024], index: 2, kind: input, shape index: {}]   ;;  %s3864_s3 = inlined_call_operand.vmem [shape: f32[1,10,1024], index: 3, kind: output, shape index: {}]  }
   0x1   :  { %v27_v0 = vld [vmem:[%s3861_s0 + $0x50] sm:$0x7]  ;;  %v28_v1 = vld [vmem:[%s3861_s0 + $0x58] sm:$0x7]  ;;  %v25_v4 = vld [vmem:[%s3861_s0 + $0x40] sm:$0x7] }
   0x2   :  { %43 = vst [vmem:[#allocation2 + $0x10] sm:$0x7] %v27_v0  ;;  %v31_v2 = vld [vmem:[%s3861_s0 + $0x70] sm:$0x7]  ;;  %v32_v3 = vld [vmem:[%s3861_s0 + $0x78] sm:$0x7] }
   0x3   :  { %44 = vst [vmem:[#allocation2 + $0x38] sm:$0x7] %v28_v1  ;;  %v26_v5 = vld [vmem:[%s3861_s0 + $0x48] sm:$0x7]  ;;  %v29_v6 = vld [vmem:[%s3861_s0 + $0x60] sm:$0x7] }
   0x4   :  { %47 = vst [vmem:[#allocation2 + $0x78] sm:$0x7] %v31_v2  ;;  %v30_v7 = vld [vmem:[%s3861_s0 + $0x68] sm:$0x7]  ;;  %v19_v9 = vld [vmem:[%s3861_s0 + $0x10] sm:$0xff]  ;;  %v20_v11 = vld [vmem:[%s3861_s0 + $0x18] sm:$0xff] }
   0x5   :  { %48 = vst [vmem:[#allocation2 + $0x28] sm:$0x7] %v32_v3  ;;  %v2961_v12 = vld [vmem:[%s3862_s1] sm:$0xff]  ;;  %v23_v15 = vld [vmem:[%s3861_s0 + $0x30] sm:$0xff]  ;;  %v24_v17 = vld [vmem:[%s3861_s0 + $0x38] sm:$0xff] }
   0x6   :  { %41 = vst [vmem:[#allocation2 + $0x40] sm:$0x7] %v25_v4  ;;  %v17_v19 = vld [vmem:[%s3861_s0] sm:$0xff]  ;;  %v18_v20 = vld [vmem:[%s3861_s0 + $0x8] sm:$0xff] }
   0x7   :  { %42 = vst [vmem:[#allocation2 + $0x20] sm:$0x7] %v26_v5  ;;  %v2987_v23 = vld [vmem:[%s3862_s1 + $0x8] sm:$0x3]  ;;  %v21_v24 = vld [vmem:[%s3861_s0 + $0x20] sm:$0xff] }
   0x8   :  { %45 = vst [vmem:[#allocation2 + $0x60] sm:$0x7] %v29_v6  ;;  %v22_v25 = vld [vmem:[%s3861_s0 + $0x28] sm:$0xff]  ;;  %v3028_v31 = vld [vmem:[%s3863_s2] sm:$0xff] }
   0x9   :  { %v59_v8 = vld [vmem:[#allocation2 + $0x10] sm:$0x7]  ;;  %46 = vst [vmem:[#allocation2 + $0x70] sm:$0x7] %v30_v7  ;;  %vm345_vm2 = vcmp.ge.s32.totalorder %v3028_v31, 6  ;;  %vm683_vm11 = vcmp.ge.s32.totalorder %v3028_v31, 5 }
   0xa   :  { %2465 = vmatpush.msk.msra.mxu2 %vm72_vm0, %v59_v8  ;;  %v60_v10 = vld [vmem:[#allocation2 + $0x38] sm:$0x7]  ;;  %v3032_v44 = vsel %vm345_vm2, 1, %v2906_v43 }
   0xb   :  { %2468 = vmatpush.msk.msra.mxu3 %vm72_vm0, %v60_v10  ;;  %v63_v13 = vld [vmem:[#allocation2 + $0x78] sm:$0x7]  ;;  %v347_v46 = vperm.slane %v3032_v44, 0  ;;  %v349_v50 = vperm.slane %v3032_v44, 2  ;;  %v348_v52 = vperm.slane %v3032_v44, 1  ;;  %v350_v58 = vperm.slane %v3032_v44, 3 }
   0xc   :  { %158 = vmatpush.msra.mxu2 %v19_v9  ;;  %v64_v14 = vld [vmem:[#allocation2 + $0x28] sm:$0x7] }
   0xd   :  { %181 = vmatpush.msra.mxu3 %v20_v11  ;;  %2466 = vmatmul.msk.f32.vlgmr.msra.gmra.mxu2 %vm65_vm1, %v2961_v12  ;;  %v57_v16 = vld [vmem:[#allocation2 + $0x40] sm:$0x7]  ;;  %vm3038_vm3 = vcmp.eq.s32.totalorder %v347_v46, 1  ;;  %vm3042_vm4 = vcmp.eq.s32.totalorder %v349_v50, 1  ;;  %vm3046_vm5 = vcmp.eq.s32.totalorder %v348_v52, 1  ;;  %vm3052_vm6 = vcmp.eq.s32.totalorder %v350_v58, 1 }
   0xe   :  { %2469 = vmatmul.msk.f32.vlgmr.msra.gmra.mxu3 %vm65_vm1, %v2961_v12  ;;  %2477 = vmatpush.msk.msrb.mxu2 %vm72_vm0, %v63_v13  ;;  %v58_v18 = vld [vmem:[#allocation2 + $0x20] sm:$0x7]  ;;  %v354_v50 = vperm.slane %v3032_v44, 7 }
   0xf   :  { %2480 = vmatpush.msk.msrb.mxu3 %vm72_vm0, %v64_v14  ;;  %2459 = vmatpush.msk.msra.mxu0 %vm72_vm0, %v57_v16  ;;  %v61_v21 = vld [vmem:[#allocation2 + $0x60] sm:$0x7] }
  0x10   :  { %250 = vmatpush.msrb.mxu2 %v23_v15  ;;  %2462 = vmatpush.msk.msra.mxu1 %vm72_vm0, %v58_v18  ;;  %v62_v22 = vld [vmem:[#allocation2 + $0x70] sm:$0x7]  ;;  %vm3100_vm10 = vcmp.eq.s32.totalorder %v354_v50, 1 }
  0x11   :  { %273 = vmatpush.msrb.mxu3 %v24_v17  ;;  %112 = vmatpush.msra.mxu0 %v17_v19 }
  0x12   :  { %135 = vmatpush.msra.mxu1 %v18_v20  ;;  %2460 = vmatmul.msk.f32.vlgmr.msra.gmra.mxu0 %vm65_vm1, %v2961_v12 }
  0x13   :  { %2463 = vmatmul.msk.f32.vlgmr.msra.gmra.mxu1 %vm65_vm1, %v2961_v12  ;;  %2471 = vmatpush.msk.msrb.mxu0 %vm72_vm0, %v61_v21 }
  0x14   :  { %2474 = vmatpush.msk.msrb.mxu1 %vm72_vm0, %v62_v22 }
  0x15   :  { %2467 = vmatmul.msk.f32.gmra.mxu2 %vm65_vm1, %v2987_v23  ;;  %204 = vmatpush.msrb.mxu0 %v21_v24 }
  0x16   :  { %2470 = vmatmul.msk.f32.gmra.mxu3 %vm65_vm1, %v2987_v23  ;;  %227 = vmatpush.msrb.mxu1 %v22_v25 }
  0x1a   :  { %2461 = vmatmul.msk.f32.gmra.mxu0 %vm65_vm1, %v2987_v23 }
  0x1b   :  { %2464 = vmatmul.msk.f32.gmra.mxu1 %vm65_vm1, %v2987_v23 }
  0x1d   :  { %2478 = vmatmul.msk.f32.vlgmr.msrb.gmra.mxu2 %vm65_vm1, %v2961_v12 }
  0x1e   :  { %2481 = vmatmul.msk.f32.vlgmr.msrb.gmra.mxu3 %vm65_vm1, %v2961_v12 }
  0x22   :  { %2472 = vmatmul.msk.f32.vlgmr.msrb.gmra.mxu0 %vm65_vm1, %v2961_v12 }
  0x23   :  { %2475 = vmatmul.msk.f32.vlgmr.msrb.gmra.mxu1 %vm65_vm1, %v2961_v12 }
  0x25   :  { %2479 = vmatmul.msk.f32.gmra.mxu2 %vm65_vm1, %v2987_v23 }
  0x26   :  { %2482 = vmatmul.msk.f32.gmra.mxu3 %vm65_vm1, %v2987_v23 }
  0x2a   :  { %2473 = vmatmul.msk.f32.gmra.mxu0 %vm65_vm1, %v2987_v23 }
  0x2b   :  { %2476 = vmatmul.msk.f32.gmra.mxu1 %vm65_vm1, %v2987_v23 }
  0x8f   :  { %v114_v26 = vpop.f32.mrf.mxu0 }
  0x90   :  { %v160_v27 = vpop.f32.mrf.mxu2  ;;  %v137_v28 = vpop.f32.mrf.mxu1  ;;  %v281_v32 = vmul.f32 0.5, %v114_v26 }
  0x91   :  { %v183_v29 = vpop.f32.mrf.mxu3  ;;  %v283_v30 = vmul.f32 0.5, %v160_v27  ;;  %v282_v42 = vmul.f32 0.5, %v137_v28 }
  0x92   :  { %v284_v40 = vmul.f32 0.5, %v183_v29 }
  0x93   :  { %2628 = vtanh.f32 %v283_v30 }
  0x94   :  { %2630 = vtanh.f32 %v281_v32 }
  0x97   :  { %v117_v33 = vpop.f32.mrf.mxu0 }
  0x98   :  { %v163_v34 = vpop.f32.mrf.mxu2  ;;  %v289_v35 = vmul.f32 0.5, %v117_v33  ;;  %v140_v36 = vpop.f32.mrf.mxu1 }
  0x99   :  { %v291_v37 = vmul.f32 0.5, %v163_v34  ;;  %v186_v38 = vpop.f32.mrf.mxu3  ;;  %v290_v39 = vmul.f32 0.5, %v140_v36  ;;  %v2629_v45 = vpop.eup %2628 }
  0x9a   :  { %v292_v41 = vmul.f32 0.5, %v186_v38  ;;  %2632 = vtanh.f32 %v289_v35  ;;  %v2631_v47 = vpop.eup %2630  ;;  %v315_v14 = vmul.f32 0.5, %v2629_v45  ;;  %v351_v38 = vperm.slane %v3032_v44, 4 }
  0x9b   :  { %2634 = vtanh.f32 %v291_v37  ;;  %v313_v7 = vmul.f32 0.5, %v2631_v47  ;;  %v352_v47 = vperm.slane %v3032_v44, 5 }
  0x9c   :  { %2636 = vtanh.f32 %v292_v41  ;;  %v331_v32 = vadd.f32 0.5, %v315_v14  ;;  %vm3078_vm7 = vcmp.eq.s32.totalorder %v351_v38, 1 }
  0x9d   :  { %2638 = vtanh.f32 %v290_v39  ;;  %v329_v26 = vadd.f32 0.5, %v313_v7  ;;  %vm3094_vm9 = vcmp.eq.s32.totalorder %v352_v47, 1 }
  0x9e   :  { %2640 = vtanh.f32 %v284_v40 }
  0x9f   :  { %2642 = vtanh.f32 %v282_v42  ;;  %v206_v48 = vpop.f32.mrf.mxu0  ;;  %v353_v42 = vperm.slane %v3032_v44, 6 }
  0xa0   :  { %v2633_v49 = vpop.eup %2632  ;;  %v252_v51 = vpop.f32.mrf.mxu2  ;;  %v285_v9 = vmul.f32 0.5, %v206_v48 }
  0xa1   :  { %v229_v53 = vpop.f32.mrf.mxu1  ;;  %v2635_v54 = vpop.eup %2634  ;;  %v321_v56 = vmul.f32 0.5, %v2633_v49  ;;  %v287_v28 = vmul.f32 0.5, %v252_v51  ;;  %vm3086_vm8 = vcmp.eq.s32.totalorder %v353_v42, 1 }
  0xa2   :  { %v275_v55 = vpop.f32.mrf.mxu3  ;;  %v2637_v57 = vpop.eup %2636  ;;  %v323_v59 = vmul.f32 0.5, %v2635_v54  ;;  %2644 = vtanh.f32 %v285_v9  ;;  %v286_v30 = vmul.f32 0.5, %v229_v53 }
  0xa3   :  { %v2639_v61 = vpop.eup %2638  ;;  %v324_v62 = vmul.f32 0.5, %v2637_v57  ;;  %v337_v63 = vadd.f32 0.5, %v321_v56  ;;  %v288_v33 = vmul.f32 0.5, %v275_v55 }
  0xa4   :  { %v2641_v0 = vpop.eup %2640  ;;  %v339_v2 = vadd.f32 0.5, %v323_v59  ;;  %v322_v4 = vmul.f32 0.5, %v2639_v61 }
  0xa5   :  { %v2643_v5 = vpop.eup %2642  ;;  %v340_v6 = vadd.f32 0.5, %v324_v62  ;;  %v371_v8 = vsel %vm3038_vm3, %v337_v63, 0.0  ;;  %v316_v17 = vmul.f32 0.5, %v2641_v0 }
  0xa6   :  { %v373_v11 = vsel %vm3042_vm4, %v339_v2, 0.0  ;;  %387 = vst [vmem:[#allocation2 + $0x40] sm:$0x3] %v371_v8  ;;  %v338_v13 = vadd.f32 0.5, %v322_v4  ;;  %v314_v19 = vmul.f32 0.5, %v2643_v5 }
  0xa7   :  { %389 = vst [vmem:[#allocation2 + $0x10] sm:$0x3] %v373_v11  ;;  %v374_v15 = vsel %vm3052_vm6, %v340_v6, 0.0  ;;  %v209_v16 = vpop.f32.mrf.mxu0  ;;  %v332_v35 = vadd.f32 0.5, %v316_v17 }
  0xa8   :  { %390 = vst [vmem:[#allocation2 + $0x38] sm:$0x3] %v374_v15  ;;  %v255_v18 = vpop.f32.mrf.mxu2  ;;  %v372_v20 = vsel %vm3046_vm5, %v338_v13, 0.0  ;;  %v293_v21 = vmul.f32 0.5, %v209_v16  ;;  %v330_v34 = vadd.f32 0.5, %v314_v19  ;;  %v2645_v39 = vpop.eup %2644 }
  0xa9   :  { %v232_v22 = vpop.f32.mrf.mxu1  ;;  %v295_v24 = vmul.f32 0.5, %v255_v18  ;;  %388 = vst [vmem:[#allocation2 + $0x20] sm:$0x3] %v372_v20  ;;  %v317_v61 = vmul.f32 0.5, %v2645_v39 }
  0xaa   :  { %v278_v25 = vpop.f32.mrf.mxu3  ;;  %v294_v27 = vmul.f32 0.5, %v232_v22  ;;  %2646 = vtanh.f32 %v293_v21 }
  0xab   :  { %v296_v29 = vmul.f32 0.5, %v278_v25  ;;  %2648 = vtanh.f32 %v295_v24  ;;  %v333_v9 = vadd.f32 0.5, %v317_v61 }
  0xad   :  { %2650 = vtanh.f32 %v296_v29  ;;  %v403_v36 = vld [vmem:[#allocation2 + $0x40] sm:$0x7] }
  0xae   :  { %2652 = vtanh.f32 %v294_v27  ;;  %v405_v37 = vld [vmem:[#allocation2 + $0x10] sm:$0x7]  ;;  %2483 = vmatpush.msk.msra.mxu0 %vm72_vm0, %v403_v36 }
  0xaf   :  { %2654 = vtanh.f32 %v287_v28  ;;  %2489 = vmatpush.msk.msra.mxu2 %vm72_vm0, %v405_v37  ;;  %v406_v40 = vld [vmem:[#allocation2 + $0x38] sm:$0x7] }
  0xb0   :  { %2656 = vtanh.f32 %v286_v30  ;;  %v2647_v41 = vpop.eup %2646  ;;  %2492 = vmatpush.msk.msra.mxu3 %vm72_vm0, %v406_v40  ;;  %v404_v45 = vld [vmem:[#allocation2 + $0x20] sm:$0x7]  ;;  %2858 = vmatpush.msk.msra.mxu0 %vm3038_vm3, %v329_v26 }
  0xb1   :  { %2658 = vtanh.f32 %v288_v33  ;;  %v2649_v46 = vpop.eup %2648  ;;  %2859 = vmatpush.msk.msra.mxu2 %vm3042_vm4, %v331_v32  ;;  %v325_v48 = vmul.f32 0.5, %v2647_v41  ;;  %2486 = vmatpush.msk.msra.mxu1 %vm72_vm0, %v404_v45  ;;  %v3148_v33 = vsel %vm683_vm11, 1, %v2906_v43 }
  0xb2   :  { %v327_v51 = vmul.f32 0.5, %v2649_v46  ;;  %2860 = vmatpush.msk.msra.mxu3 %vm3052_vm6, %v332_v35  ;;  %2490 = vmatmul.msk.f32.vlgmr.msra.gmra.mxu2 %vm65_vm1, %v2961_v12  ;;  %v685_v36 = vperm.slane %v3148_v33, 0  ;;  %v686_v38 = vperm.slane %v3148_v33, 1  ;;  %v687_v50 = vperm.slane %v3148_v33, 2 }
  0xb3   :  { %v2651_v49 = vpop.eup %2650  ;;  %2493 = vmatmul.msk.f32.vlgmr.msra.gmra.mxu3 %vm65_vm1, %v2961_v12  ;;  %v341_v55 = vadd.f32 0.5, %v325_v48  ;;  %2861 = vmatpush.msk.msra.mxu1 %vm3046_vm5, %v330_v34  ;;  %vm1021_vm6 = vcmp.ge.s32.totalorder %v3028_v31, 4 }
  0xb4   :  { %v2653_v53 = vpop.eup %2652  ;;  %v328_v54 = vmul.f32 0.5, %v2651_v49  ;;  %v343_v57 = vadd.f32 0.5, %v327_v51  ;;  %2484 = vmatmul.msk.f32.vlgmr.msra.gmra.mxu0 %vm65_vm1, %v2961_v12  ;;  %2487 = vmatmul.msk.f32.vlgmr.msra.gmra.mxu1 %vm65_vm1, %v2961_v12  ;;  %vm3152_vm12 = vcmp.eq.s32.totalorder %v685_v36, 1  ;;  %vm3157_vm13 = vcmp.eq.s32.totalorder %v686_v38, 1 }
  0xb5   :  { %v2655_v44 = vpop.eup %2654  ;;  %v326_v58 = vmul.f32 0.5, %v2653_v53  ;;  %v375_v63 = vsel %vm3078_vm7, %v341_v55, 0.0  ;;  %vm3166_vm14 = vcmp.eq.s32.totalorder %v687_v50, 1 }
  0xb6   :  { %v2657_v59 = vpop.eup %2656  ;;  %v344_v60 = vadd.f32 0.5, %v328_v54  ;;  %v377_v2 = vsel %vm3086_vm8, %v343_v57, 0.0  ;;  %391 = vst [vmem:[#allocation2 + $0x60] sm:$0x3] %v375_v63  ;;  %v319_v5 = vmul.f32 0.5, %v2655_v44  ;;  %v688_v57 = vperm.slane %v3148_v33, 3 }
  0xb7   :  { %v2659_v0 = vpop.eup %2658  ;;  %v342_v3 = vadd.f32 0.5, %v326_v58  ;;  %393 = vst [vmem:[#allocation2 + $0x78] sm:$0x3] %v377_v2  ;;  %v318_v6 = vmul.f32 0.5, %v2657_v59 }
  0xb8   :  { %v378_v4 = vsel %vm3100_vm10, %v344_v60, 0.0  ;;  %v320_v8 = vmul.f32 0.5, %v2659_v0  ;;  %v335_v10 = vadd.f32 0.5, %v319_v5  ;;  %vm3170_vm15 = vcmp.eq.s32.totalorder %v688_v57, 1 }
  0xb9   :  { %394 = vst [vmem:[#allocation2 + $0x28] sm:$0x3] %v378_v4  ;;  %v376_v7 = vsel %vm3094_vm9, %v342_v3, 0.0  ;;  %v334_v11 = vadd.f32 0.5, %v318_v6 }
  0xba   :  { %392 = vst [vmem:[#allocation2 + $0x70] sm:$0x3] %v376_v7  ;;  %2491 = vmatmul.msk.f32.gmra.mxu2 %vm65_vm1, %v2987_v23  ;;  %v336_v13 = vadd.f32 0.5, %v320_v8 }
  0xbb   :  { %2494 = vmatmul.msk.f32.gmra.mxu3 %vm65_vm1, %v2987_v23 }
  0xbc   :  { %2485 = vmatmul.msk.f32.gmra.mxu0 %vm65_vm1, %v2987_v23  ;;  %2488 = vmatmul.msk.f32.gmra.mxu1 %vm65_vm1, %v2987_v23 }
  0xbd   :  { %v407_v14 = vld [vmem:[#allocation2 + $0x60] sm:$0x7] }
  0xbe   :  { %v409_v15 = vld [vmem:[#allocation2 + $0x78] sm:$0x7]  ;;  %2495 = vmatpush.msk.msrb.mxu0 %vm72_vm0, %v407_v14 }
  0xbf   :  { %2501 = vmatpush.msk.msrb.mxu2 %vm72_vm0, %v409_v15 }
  0xc0   :  { %v410_v16 = vld [vmem:[#allocation2 + $0x28] sm:$0x7]  ;;  %2862 = vmatpush.msk.msrb.mxu0 %vm3078_vm7, %v333_v9 }
  0xc1   :  { %2504 = vmatpush.msk.msrb.mxu3 %vm72_vm0, %v410_v16  ;;  %v408_v17 = vld [vmem:[#allocation2 + $0x70] sm:$0x7]  ;;  %2863 = vmatpush.msk.msrb.mxu2 %vm3086_vm8, %v335_v10 }
  0xc2   :  { %2498 = vmatpush.msk.msrb.mxu1 %vm72_vm0, %v408_v17  ;;  %2502 = vmatmul.msk.f32.vlgmr.msrb.gmra.mxu2 %vm65_vm1, %v2961_v12 }
  0xc3   :  { %2864 = vmatpush.msk.msrb.mxu3 %vm3100_vm10, %v336_v13 }
  0xc4   :  { %2505 = vmatmul.msk.f32.vlgmr.msrb.gmra.mxu3 %vm65_vm1, %v2961_v12  ;;  %2865 = vmatpush.msk.msrb.mxu1 %vm3094_vm9, %v334_v11 }
  0xc5   :  { %2496 = vmatmul.msk.f32.vlgmr.msrb.gmra.mxu0 %vm65_vm1, %v2961_v12  ;;  %2499 = vmatmul.msk.f32.vlgmr.msrb.gmra.mxu1 %vm65_vm1, %v2961_v12 }
  0xca   :  { %2503 = vmatmul.msk.f32.gmra.mxu2 %vm65_vm1, %v2987_v23 }
  0xcc   :  { %2506 = vmatmul.msk.f32.gmra.mxu3 %vm65_vm1, %v2987_v23 }
  0xcd   :  { %2497 = vmatmul.msk.f32.gmra.mxu0 %vm65_vm1, %v2987_v23  ;;  %2500 = vmatmul.msk.f32.gmra.mxu1 %vm65_vm1, %v2987_v23 }
 0x131   :  { %v452_v18 = vpop.f32.mrf.mxu0  ;;  %v475_v19 = vpop.f32.mrf.mxu1 }
 0x132   :  { %v619_v25 = vmul.f32 0.5, %v452_v18  ;;  %v620_v28 = vmul.f32 0.5, %v475_v19 }
 0x135   :  { %v498_v20 = vpop.f32.mrf.mxu2 }
 0x136   :  { %v521_v21 = vpop.f32.mrf.mxu3  ;;  %v621_v35 = vmul.f32 0.5, %v498_v20 }
 0x137   :  { %v622_v37 = vmul.f32 0.5, %v521_v21 }
 0x139   :  { %v455_v22 = vpop.f32.mrf.mxu0  ;;  %v478_v24 = vpop.f32.mrf.mxu1 }
 0x13a   :  { %v627_v26 = vmul.f32 0.5, %v455_v22  ;;  %v628_v27 = vmul.f32 0.5, %v478_v24 }
 0x13c   :  { %2660 = vtanh.f32 %v627_v26  ;;  %v689_v26 = vperm.slane %v3148_v33, 4 }
 0x13d   :  { %v501_v29 = vpop.f32.mrf.mxu2  ;;  %2662 = vtanh.f32 %v628_v27 }
 0x13e   :  { %v629_v30 = vmul.f32 0.5, %v501_v29  ;;  %v524_v32 = vpop.f32.mrf.mxu3  ;;  %2664 = vtanh.f32 %v619_v25  ;;  %vm3189_vm2 = vcmp.eq.s32.totalorder %v689_v26, 1 }
 0x13f   :  { %v630_v34 = vmul.f32 0.5, %v524_v32  ;;  %2666 = vtanh.f32 %v620_v28 }
 0x140   :  { %2668 = vtanh.f32 %v629_v30  ;;  %v690_v30 = vperm.slane %v3148_v33, 5 }
 0x141   :  { %2670 = vtanh.f32 %v630_v34 }
 0x142   :  { %v544_v39 = vpop.f32.mrf.mxu0  ;;  %v567_v40 = vpop.f32.mrf.mxu1  ;;  %2672 = vtanh.f32 %v621_v35  ;;  %vm3196_vm3 = vcmp.eq.s32.totalorder %v690_v30, 1 }
 0x143   :  { %v2661_v41 = vpop.eup %2660  ;;  %2674 = vtanh.f32 %v622_v37  ;;  %v623_v6 = vmul.f32 0.5, %v544_v39  ;;  %v624_v14 = vmul.f32 0.5, %v567_v40 }
 0x144   :  { %v2663_v42 = vpop.eup %2662  ;;  %v659_v45 = vmul.f32 0.5, %v2661_v41 }
 0x145   :  { %v2665_v46 = vpop.eup %2664  ;;  %v660_v48 = vmul.f32 0.5, %v2663_v42  ;;  %v590_v51 = vpop.f32.mrf.mxu2 }
 0x146   :  { %v2667_v49 = vpop.eup %2666  ;;  %v675_v53 = vadd.f32 0.5, %v659_v45  ;;  %v651_v59 = vmul.f32 0.5, %v2665_v46  ;;  %v625_v25 = vmul.f32 0.5, %v590_v51  ;;  %v692_v51 = vperm.slane %v3148_v33, 7 }
 0x147   :  { %v2669_v54 = vpop.eup %2668  ;;  %v613_v55 = vpop.f32.mrf.mxu3  ;;  %v676_v44 = vadd.f32 0.5, %v660_v48  ;;  %v652_v62 = vmul.f32 0.5, %v2667_v49  ;;  %v691_v48 = vperm.slane %v3148_v33, 6 }
 0x148   :  { %v2671_v56 = vpop.eup %2670  ;;  %v661_v58 = vmul.f32 0.5, %v2669_v54  ;;  %v709_v60 = vsel %vm3152_vm12, %v675_v53, 0.0  ;;  %v667_v13 = vadd.f32 0.5, %v651_v59  ;;  %v626_v29 = vmul.f32 0.5, %v613_v55 }
 0x149   :  { %v662_v61 = vmul.f32 0.5, %v2671_v56  ;;  %725 = vst [vmem:[#allocation2 + $0x40] sm:$0x3] %v709_v60  ;;  %v710_v63 = vsel %vm3157_vm13, %v676_v44, 0.0  ;;  %v2673_v4 = vpop.eup %2672  ;;  %v668_v16 = vadd.f32 0.5, %v652_v62  ;;  %vm3214_vm4 = vcmp.eq.s32.totalorder %v691_v48, 1 }
 0x14a   :  { %v677_v1 = vadd.f32 0.5, %v661_v58  ;;  %726 = vst [vmem:[#allocation2 + $0x20] sm:$0x3] %v710_v63  ;;  %v547_v2 = vpop.f32.mrf.mxu0  ;;  %v570_v3 = vpop.f32.mrf.mxu1  ;;  %v653_v17 = vmul.f32 0.5, %v2673_v4  ;;  %vm3218_vm5 = vcmp.eq.s32.totalorder %v692_v51, 1 }
 0x14b   :  { %v678_v5 = vadd.f32 0.5, %v662_v61  ;;  %v631_v7 = vmul.f32 0.5, %v547_v2  ;;  %v632_v8 = vmul.f32 0.5, %v570_v3  ;;  %v2675_v9 = vpop.eup %2674 }
 0x14c   :  { %v711_v11 = vsel %vm3166_vm14, %v677_v1, 0.0  ;;  %v654_v19 = vmul.f32 0.5, %v2675_v9  ;;  %v669_v28 = vadd.f32 0.5, %v653_v17 }
 0x14d   :  { %727 = vst [vmem:[#allocation2 + $0x10] sm:$0x3] %v711_v11  ;;  %v712_v15 = vsel %vm3170_vm15, %v678_v5, 0.0  ;;  %2676 = vtanh.f32 %v631_v7  ;;  %v593_v18 = vpop.f32.mrf.mxu2 }
 0x14e   :  { %728 = vst [vmem:[#allocation2 + $0x38] sm:$0x3] %v712_v15  ;;  %2678 = vtanh.f32 %v632_v8  ;;  %v633_v20 = vmul.f32 0.5, %v593_v18  ;;  %v670_v34 = vadd.f32 0.5, %v654_v19 }
 0x14f   :  { %v616_v21 = vpop.f32.mrf.mxu3  ;;  %2680 = vtanh.f32 %v623_v6 }
 0x150   :  { %v634_v22 = vmul.f32 0.5, %v616_v21  ;;  %2682 = vtanh.f32 %v624_v14  ;;  %v741_v24 = vld [vmem:[#allocation2 + $0x40] sm:$0x7]  ;;  %v3264_v21 = vsel %vm1021_vm6, 1, %v2906_v43 }
 0x151   :  { %2684 = vtanh.f32 %v633_v20  ;;  %2507 = vmatpush.msk.msra.mxu0 %vm72_vm0, %v741_v24  ;;  %v742_v27 = vld [vmem:[#allocation2 + $0x20] sm:$0x7]  ;;  %v1024_v24 = vperm.slane %v3264_v21, 1  ;;  %v1026_v61 = vperm.slane %v3264_v21, 3 }
 0x152   :  { %2686 = vtanh.f32 %v634_v22  ;;  %2510 = vmatpush.msk.msra.mxu1 %vm72_vm0, %v742_v27  ;;  %v1023_v22 = vperm.slane %v3264_v21, 0 }
 0x153   :  { %v2677_v32 = vpop.eup %2676  ;;  %2866 = vmatpush.msk.msra.mxu0 %vm3152_vm12, %v667_v13  ;;  %2688 = vtanh.f32 %v625_v25  ;;  %vm3272_vm8 = vcmp.eq.s32.totalorder %v1024_v24, 1  ;;  %vm3288_vm10 = vcmp.eq.s32.totalorder %v1026_v61, 1 }
 0x154   :  { %v2679_v35 = vpop.eup %2678  ;;  %v743_v36 = vld [vmem:[#allocation2 + $0x10] sm:$0x7]  ;;  %v663_v37 = vmul.f32 0.5, %v2677_v32  ;;  %2867 = vmatpush.msk.msra.mxu1 %vm3157_vm13, %v668_v16  ;;  %2508 = vmatmul.msk.f32.vlgmr.msra.gmra.mxu0 %vm65_vm1, %v2961_v12  ;;  %2690 = vtanh.f32 %v626_v29  ;;  %vm3268_vm7 = vcmp.eq.s32.totalorder %v1023_v22, 1 }
 0x155   :  { %v2681_v38 = vpop.eup %2680  ;;  %2513 = vmatpush.msk.msra.mxu2 %vm72_vm0, %v743_v36  ;;  %v744_v39 = vld [vmem:[#allocation2 + $0x38] sm:$0x7]  ;;  %v664_v41 = vmul.f32 0.5, %v2679_v35  ;;  %2511 = vmatmul.msk.f32.vlgmr.msra.gmra.mxu1 %vm65_vm1, %v2961_v12 }
 0x156   :  { %v2683_v42 = vpop.eup %2682  ;;  %2516 = vmatpush.msk.msra.mxu3 %vm72_vm0, %v744_v39  ;;  %v679_v46 = vadd.f32 0.5, %v663_v37  ;;  %v655_v53 = vmul.f32 0.5, %v2681_v38 }
 0x157   :  { %v2685_v47 = vpop.eup %2684  ;;  %2868 = vmatpush.msk.msra.mxu2 %vm3166_vm14, %v669_v28  ;;  %v680_v49 = vadd.f32 0.5, %v664_v41  ;;  %v656_v44 = vmul.f32 0.5, %v2683_v42 }
 0x158   :  { %v2687_v50 = vpop.eup %2686  ;;  %v665_v52 = vmul.f32 0.5, %v2685_v47  ;;  %2869 = vmatpush.msk.msra.mxu3 %vm3170_vm15, %v670_v34  ;;  %2514 = vmatmul.msk.f32.vlgmr.msra.gmra.mxu2 %vm65_vm1, %v2961_v12  ;;  %v713_v54 = vsel %vm3189_vm2, %v679_v46, 0.0  ;;  %v671_v63 = vadd.f32 0.5, %v655_v53 }
 0x159   :  { %v666_v55 = vmul.f32 0.5, %v2687_v50  ;;  %2517 = vmatmul.msk.f32.vlgmr.msra.gmra.mxu3 %vm65_vm1, %v2961_v12  ;;  %729 = vst [vmem:[#allocation2 + $0x60] sm:$0x3] %v713_v54  ;;  %v714_v33 = vsel %vm3196_vm3, %v680_v49, 0.0  ;;  %v2689_v57 = vpop.eup %2688  ;;  %v672_v1 = vadd.f32 0.5, %v656_v44 }
 0x15a   :  { %v681_v56 = vadd.f32 0.5, %v665_v52  ;;  %730 = vst [vmem:[#allocation2 + $0x70] sm:$0x3] %v714_v33  ;;  %v2691_v60 = vpop.eup %2690  ;;  %v657_v2 = vmul.f32 0.5, %v2689_v57  ;;  %v1025_v57 = vperm.slane %v3264_v21, 2 }
 0x15b   :  { %v682_v59 = vadd.f32 0.5, %v666_v55  ;;  %v658_v3 = vmul.f32 0.5, %v2691_v60 }
 0x15c   :  { %v715_v62 = vsel %vm3214_vm4, %v681_v56, 0.0  ;;  %2509 = vmatmul.msk.f32.gmra.mxu0 %vm65_vm1, %v2987_v23  ;;  %v673_v6 = vadd.f32 0.5, %v657_v2  ;;  %vm3282_vm9 = vcmp.eq.s32.totalorder %v1025_v57, 1 }
 0x15d   :  { %731 = vst [vmem:[#allocation2 + $0x78] sm:$0x3] %v715_v62  ;;  %v716_v0 = vsel %vm3218_vm5, %v682_v59, 0.0  ;;  %2512 = vmatmul.msk.f32.gmra.mxu1 %vm65_vm1, %v2987_v23  ;;  %v674_v7 = vadd.f32 0.5, %v658_v3 }
 0x15e   :  { %732 = vst [vmem:[#allocation2 + $0x28] sm:$0x3] %v716_v0 }
 0x160   :  { %2515 = vmatmul.msk.f32.gmra.mxu2 %vm65_vm1, %v2987_v23  ;;  %v745_v4 = vld [vmem:[#allocation2 + $0x60] sm:$0x7] }
 0x161   :  { %2518 = vmatmul.msk.f32.gmra.mxu3 %vm65_vm1, %v2987_v23  ;;  %2519 = vmatpush.msk.msrb.mxu0 %vm72_vm0, %v745_v4  ;;  %v746_v5 = vld [vmem:[#allocation2 + $0x70] sm:$0x7] }
 0x162   :  { %2522 = vmatpush.msk.msrb.mxu1 %vm72_vm0, %v746_v5  ;;  %v1027_v5 = vperm.slane %v3264_v21, 4 }
 0x163   :  { %2870 = vmatpush.msk.msrb.mxu0 %vm3189_vm2, %v671_v63 }
 0x164   :  { %v747_v8 = vld [vmem:[#allocation2 + $0x78] sm:$0x7]  ;;  %2871 = vmatpush.msk.msrb.mxu1 %vm3196_vm3, %v672_v1  ;;  %2520 = vmatmul.msk.f32.vlgmr.msrb.gmra.mxu0 %vm65_vm1, %v2961_v12  ;;  %vm3304_vm11 = vcmp.eq.s32.totalorder %v1027_v5, 1 }
 0x165   :  { %2525 = vmatpush.msk.msrb.mxu2 %vm72_vm0, %v747_v8  ;;  %v748_v9 = vld [vmem:[#allocation2 + $0x28] sm:$0x7]  ;;  %2523 = vmatmul.msk.f32.vlgmr.msrb.gmra.mxu1 %vm65_vm1, %v2961_v12 }
 0x166   :  { %2528 = vmatpush.msk.msrb.mxu3 %vm72_vm0, %v748_v9 }
 0x167   :  { %2872 = vmatpush.msk.msrb.mxu2 %vm3214_vm4, %v673_v6 }
 0x168   :  { %2873 = vmatpush.msk.msrb.mxu3 %vm3218_vm5, %v674_v7  ;;  %2526 = vmatmul.msk.f32.vlgmr.msrb.gmra.mxu2 %vm65_vm1, %v2961_v12 }
 0x169   :  { %2529 = vmatmul.msk.f32.vlgmr.msrb.gmra.mxu3 %vm65_vm1, %v2961_v12 }
 0x16c   :  { %2521 = vmatmul.msk.f32.gmra.mxu0 %vm65_vm1, %v2987_v23 }
 0x16d   :  { %2524 = vmatmul.msk.f32.gmra.mxu1 %vm65_vm1, %v2987_v23 }
 0x170   :  { %2527 = vmatmul.msk.f32.gmra.mxu2 %vm65_vm1, %v2987_v23 }
 0x171   :  { %2530 = vmatmul.msk.f32.gmra.mxu3 %vm65_vm1, %v2987_v23 }
 0x1d1   :  { %v790_v10 = vpop.f32.mrf.mxu0 }
 0x1d2   :  { %v813_v11 = vpop.f32.mrf.mxu1  ;;  %v957_v14 = vmul.f32 0.5, %v790_v10  ;;  %v1028_v10 = vperm.slane %v3264_v21, 5 }
 0x1d3   :  { %v958_v18 = vmul.f32 0.5, %v813_v11 }
 0x1d4   :  { %vm3310_vm12 = vcmp.eq.s32.totalorder %v1028_v10, 1 }
 0x1d9   :  { %v793_v13 = vpop.f32.mrf.mxu0 }
 0x1da   :  { %v965_v15 = vmul.f32 0.5, %v793_v13  ;;  %v816_v16 = vpop.f32.mrf.mxu1 }
 0x1db   :  { %v836_v17 = vpop.f32.mrf.mxu2  ;;  %v966_v19 = vmul.f32 0.5, %v816_v16 }
 0x1dc   :  { %v859_v20 = vpop.f32.mrf.mxu3  ;;  %2692 = vtanh.f32 %v965_v15  ;;  %v959_v38 = vmul.f32 0.5, %v836_v17 }
 0x1dd   :  { %2694 = vtanh.f32 %v966_v19  ;;  %v960_v45 = vmul.f32 0.5, %v859_v20 }
 0x1de   :  { %2696 = vtanh.f32 %v957_v14 }
 0x1df   :  { %2698 = vtanh.f32 %v958_v18 }
 0x1e1   :  { %v882_v25 = vpop.f32.mrf.mxu0 }
 0x1e2   :  { %v2693_v26 = vpop.eup %2692  ;;  %v905_v27 = vpop.f32.mrf.mxu1  ;;  %v961_v51 = vmul.f32 0.5, %v882_v25 }
 0x1e3   :  { %v2695_v28 = vpop.eup %2694  ;;  %v839_v29 = vpop.f32.mrf.mxu2  ;;  %v997_v30 = vmul.f32 0.5, %v2693_v26  ;;  %v962_v44 = vmul.f32 0.5, %v905_v27 }
 0x1e4   :  { %v2697_v32 = vpop.eup %2696  ;;  %v967_v31 = vmul.f32 0.5, %v839_v29  ;;  %v862_v34 = vpop.f32.mrf.mxu3  ;;  %v998_v36 = vmul.f32 0.5, %v2695_v28 }
 0x1e5   :  { %v2699_v37 = vpop.eup %2698  ;;  %v968_v39 = vmul.f32 0.5, %v862_v34  ;;  %v1013_v41 = vadd.f32 0.5, %v997_v30  ;;  %v989_v46 = vmul.f32 0.5, %v2697_v32 }
 0x1e6   :  { %2700 = vtanh.f32 %v967_v31  ;;  %v1014_v42 = vadd.f32 0.5, %v998_v36  ;;  %v990_v48 = vmul.f32 0.5, %v2699_v37 }
 0x1e7   :  { %2702 = vtanh.f32 %v968_v39  ;;  %v1047_v47 = vsel %vm3268_vm7, %v1013_v41, 0.0  ;;  %v1005_v54 = vadd.f32 0.5, %v989_v46 }
 0x1e8   :  { %1063 = vst [vmem:[#allocation2 + $0x40] sm:$0x3] %v1047_v47  ;;  %v1048_v49 = vsel %vm3272_vm8, %v1014_v42, 0.0  ;;  %2704 = vtanh.f32 %v959_v38  ;;  %v1006_v58 = vadd.f32 0.5, %v990_v48  ;;  %v1030_v48 = vperm.slane %v3264_v21, 7 }
 0x1e9   :  { %1064 = vst [vmem:[#allocation2 + $0x20] sm:$0x3] %v1048_v49  ;;  %v885_v50 = vpop.f32.mrf.mxu0  ;;  %2706 = vtanh.f32 %v960_v45  ;;  %v1029_v45 = vperm.slane %v3264_v21, 6 }
 0x1ea   :  { %v969_v52 = vmul.f32 0.5, %v885_v50  ;;  %v908_v53 = vpop.f32.mrf.mxu1  ;;  %v3333_v50 = vld [vmem:[%s3862_s1] sm:$0xff]  ;;  %vm3344_vm14 = vcmp.eq.s32.totalorder %v1030_v48, 1 }
 0x1eb   :  { %v928_v55 = vpop.f32.mrf.mxu2  ;;  %v970_v33 = vmul.f32 0.5, %v908_v53  ;;  %vm3339_vm13 = vcmp.eq.s32.totalorder %v1029_v45, 1 }
 0x1ec   :  { %v2701_v56 = vpop.eup %2700  ;;  %v951_v59 = vpop.f32.mrf.mxu3  ;;  %2708 = vtanh.f32 %v969_v52  ;;  %v963_v32 = vmul.f32 0.5, %v928_v55 }
 0x1ed   :  { %v2703_v60 = vpop.eup %2702  ;;  %v999_v62 = vmul.f32 0.5, %v2701_v56  ;;  %2710 = vtanh.f32 %v970_v33  ;;  %v964_v34 = vmul.f32 0.5, %v951_v59 }
 0x1ee   :  { %v1000_v63 = vmul.f32 0.5, %v2703_v60  ;;  %2712 = vtanh.f32 %v961_v51  ;;  %v2705_v0 = vpop.eup %2704  ;;  %v3364_v60 = vld [vmem:[%s3862_s1 + $0x8] sm:$0x3] }
 0x1ef   :  { %v1015_v1 = vadd.f32 0.5, %v999_v62  ;;  %2714 = vtanh.f32 %v962_v44  ;;  %v1079_v2 = vld [vmem:[#allocation2 + $0x40] sm:$0x7]  ;;  %v2707_v7 = vpop.eup %2706  ;;  %v991_v13 = vmul.f32 0.5, %v2705_v0 }
 0x1f0   :  { %v1016_v4 = vadd.f32 0.5, %v1000_v63  ;;  %2531 = vmatpush.msk.msra.mxu0 %vm72_vm0, %v1079_v2  ;;  %v1080_v6 = vld [vmem:[#allocation2 + $0x20] sm:$0x7]  ;;  %v992_v19 = vmul.f32 0.5, %v2707_v7 }
 0x1f1   :  { %v1049_v9 = vsel %vm3282_vm9, %v1015_v1, 0.0  ;;  %2534 = vmatpush.msk.msra.mxu1 %vm72_vm0, %v1080_v6  ;;  %v1007_v30 = vadd.f32 0.5, %v991_v13 }
 0x1f2   :  { %v2709_v11 = vpop.eup %2708  ;;  %1065 = vst [vmem:[#allocation2 + $0x10] sm:$0x3] %v1049_v9  ;;  %v1050_v14 = vsel %vm3288_vm10, %v1016_v4, 0.0  ;;  %2874 = vmatpush.msk.msra.mxu0 %vm3268_vm7, %v1005_v54  ;;  %v1008_v37 = vadd.f32 0.5, %v992_v19  ;;  %v3391_v9 = vld [vmem:[%s3863_s2] sm:$0xff] }
 0x1f3   :  { %v2711_v15 = vpop.eup %2710  ;;  %1066 = vst [vmem:[#allocation2 + $0x38] sm:$0x3] %v1050_v14  ;;  %v931_v16 = vpop.f32.mrf.mxu2  ;;  %v1001_v17 = vmul.f32 0.5, %v2709_v11  ;;  %2875 = vmatpush.msk.msra.mxu1 %vm3272_vm8, %v1006_v58  ;;  %2532 = vmatmul.msk.f32.vlgmr.msra.gmra.mxu0 %vm65_vm1, %v2961_v12  ;;  %vm1359_vm15 = vcmp.ge.s32.totalorder %v3391_v9, 3 }
 0x1f4   :  { %v2713_v18 = vpop.eup %2712  ;;  %v971_v20 = vmul.f32 0.5, %v931_v16  ;;  %v954_v22 = vpop.f32.mrf.mxu3  ;;  %v1002_v25 = vmul.f32 0.5, %v2711_v15  ;;  %2535 = vmatmul.msk.f32.vlgmr.msra.gmra.mxu1 %vm65_vm1, %v2961_v12  ;;  %v3395_v10 = vsel %vm1359_vm15, 1, %v2906_v43 }
 0x1f5   :  { %v2715_v26 = vpop.eup %2714  ;;  %v972_v27 = vmul.f32 0.5, %v954_v22  ;;  %v1017_v29 = vadd.f32 0.5, %v1001_v17  ;;  %v993_v35 = vmul.f32 0.5, %v2713_v18  ;;  %v1361_v11 = vperm.slane %v3395_v10, 0 }
 0x1f6   :  { %2716 = vtanh.f32 %v971_v20  ;;  %v1018_v31 = vadd.f32 0.5, %v1002_v25  ;;  %v994_v38 = vmul.f32 0.5, %v2715_v26  ;;  %v1362_v14 = vperm.slane %v3395_v10, 1 }
 0x1f7   :  { %2718 = vtanh.f32 %v972_v27  ;;  %v1051_v36 = vsel %vm3304_vm11, %v1017_v29, 0.0  ;;  %v1009_v41 = vadd.f32 0.5, %v993_v35  ;;  %vm3399_vm2 = vcmp.eq.s32.totalorder %v1361_v11, 1 }
 0x1f8   :  { %1067 = vst [vmem:[#allocation2 + $0x60] sm:$0x3] %v1051_v36  ;;  %v1052_v12 = vsel %vm3310_vm12, %v1018_v31, 0.0  ;;  %2720 = vtanh.f32 %v963_v32  ;;  %v1010_v46 = vadd.f32 0.5, %v994_v38  ;;  %vm3403_vm3 = vcmp.eq.s32.totalorder %v1362_v14, 1 }
 0x1f9   :  { %v1081_v39 = vld [vmem:[#allocation2 + $0x10] sm:$0x7]  ;;  %1068 = vst [vmem:[#allocation2 + $0x70] sm:$0x3] %v1052_v12  ;;  %2722 = vtanh.f32 %v964_v34 }
 0x1fa   :  { %2537 = vmatpush.msk.msra.mxu2 %vm72_vm0, %v1081_v39  ;;  %v1082_v40 = vld [vmem:[#allocation2 + $0x38] sm:$0x7] }
 0x1fb   :  { %2540 = vmatpush.msk.msra.mxu3 %vm72_vm0, %v1082_v40  ;;  %2533 = vmatmul.msk.f32.gmra.mxu0 %vm65_vm1, %v2987_v23 }
 0x1fc   :  { %v2717_v42 = vpop.eup %2716  ;;  %2876 = vmatpush.msk.msra.mxu2 %vm3282_vm9, %v1007_v30  ;;  %2536 = vmatmul.msk.f32.gmra.mxu1 %vm65_vm1, %v2987_v23 }
 0x1fd   :  { %v2719_v47 = vpop.eup %2718  ;;  %v1003_v49 = vmul.f32 0.5, %v2717_v42  ;;  %2877 = vmatpush.msk.msra.mxu3 %vm3288_vm10, %v1008_v37  ;;  %2538 = vmatmul.msk.f32.vlgmr.msra.gmra.mxu2 %vm65_vm1, %v3333_v50  ;;  %vm1697_vm10 = vcmp.ge.s32.totalorder %v3391_v9, 2 }
 0x1fe   :  { %v1004_v51 = vmul.f32 0.5, %v2719_v47  ;;  %2541 = vmatmul.msk.f32.vlgmr.msra.gmra.mxu3 %vm65_vm1, %v3333_v50  ;;  %v2721_v53 = vpop.eup %2720 }
 0x1ff   :  { %v1019_v23 = vadd.f32 0.5, %v1003_v49  ;;  %v1083_v52 = vld [vmem:[#allocation2 + $0x60] sm:$0x7]  ;;  %v2723_v44 = vpop.eup %2722  ;;  %v995_v58 = vmul.f32 0.5, %v2721_v53 }
 0x200   :  { %v1020_v54 = vadd.f32 0.5, %v1004_v51  ;;  %2543 = vmatpush.msk.msrb.mxu0 %vm72_vm0, %v1083_v52  ;;  %v1084_v55 = vld [vmem:[#allocation2 + $0x70] sm:$0x7]  ;;  %v996_v59 = vmul.f32 0.5, %v2723_v44  ;;  %v1365_v44 = vperm.slane %v3395_v10, 4 }
 0x201   :  { %v1053_v56 = vsel %vm3339_vm13, %v1019_v23, 0.0  ;;  %2546 = vmatpush.msk.msrb.mxu1 %vm72_vm0, %v1084_v55  ;;  %v1011_v61 = vadd.f32 0.5, %v995_v58  ;;  %v1366_v58 = vperm.slane %v3395_v10, 5 }
 0x202   :  { %1069 = vst [vmem:[#allocation2 + $0x78] sm:$0x3] %v1053_v56  ;;  %v1054_v57 = vsel %vm3344_vm14, %v1020_v54, 0.0  ;;  %2878 = vmatpush.msk.msrb.mxu0 %vm3304_vm11, %v1009_v41  ;;  %v1012_v62 = vadd.f32 0.5, %v996_v59  ;;  %v1363_v54 = vperm.slane %v3395_v10, 2  ;;  %v1364_v56 = vperm.slane %v3395_v10, 3 }
 0x203   :  { %1070 = vst [vmem:[#allocation2 + $0x28] sm:$0x3] %v1054_v57  ;;  %2879 = vmatpush.msk.msrb.mxu1 %vm3310_vm12, %v1010_v46  ;;  %2544 = vmatmul.msk.f32.vlgmr.msrb.gmra.mxu0 %vm65_vm1, %v3333_v50  ;;  %vm3429_vm5 = vcmp.eq.s32.totalorder %v1365_v44, 1  ;;  %vm3439_vm7 = vcmp.eq.s32.totalorder %v1366_v58, 1 }
 0x204   :  { %2547 = vmatmul.msk.f32.vlgmr.msrb.gmra.mxu1 %vm65_vm1, %v3333_v50  ;;  %vm3425_vm4 = vcmp.eq.s32.totalorder %v1363_v54, 1  ;;  %vm3433_vm6 = vcmp.eq.s32.totalorder %v1364_v56, 1 }
 0x205   :  { %2539 = vmatmul.msk.f32.gmra.mxu2 %vm65_vm1, %v3364_v60 }
 0x206   :  { %2542 = vmatmul.msk.f32.gmra.mxu3 %vm65_vm1, %v3364_v60 }
 0x209   :  { %v1085_v63 = vld [vmem:[#allocation2 + $0x78] sm:$0x7] }
 0x20a   :  { %2549 = vmatpush.msk.msrb.mxu2 %vm72_vm0, %v1085_v63  ;;  %v1086_v0 = vld [vmem:[#allocation2 + $0x28] sm:$0x7] }
 0x20b   :  { %2552 = vmatpush.msk.msrb.mxu3 %vm72_vm0, %v1086_v0  ;;  %2545 = vmatmul.msk.f32.gmra.mxu0 %vm65_vm1, %v3364_v60 }
 0x20c   :  { %2880 = vmatpush.msk.msrb.mxu2 %vm3339_vm13, %v1011_v61  ;;  %2548 = vmatmul.msk.f32.gmra.mxu1 %vm65_vm1, %v3364_v60 }
 0x20d   :  { %2881 = vmatpush.msk.msrb.mxu3 %vm3344_vm14, %v1012_v62  ;;  %2550 = vmatmul.msk.f32.vlgmr.msrb.gmra.mxu2 %vm65_vm1, %v3333_v50 }
 0x20e   :  { %2553 = vmatmul.msk.f32.vlgmr.msrb.gmra.mxu3 %vm65_vm1, %v3333_v50 }
 0x215   :  { %2551 = vmatmul.msk.f32.gmra.mxu2 %vm65_vm1, %v3364_v60 }
 0x216   :  { %2554 = vmatmul.msk.f32.gmra.mxu3 %vm65_vm1, %v3364_v60 }
 0x270   :  { %v1128_v1 = vpop.f32.mrf.mxu0 }
 0x271   :  { %v1151_v2 = vpop.f32.mrf.mxu1  ;;  %v1295_v4 = vmul.f32 0.5, %v1128_v1 }
 0x272   :  { %v1296_v7 = vmul.f32 0.5, %v1151_v2  ;;  %v3511_v2 = vsel %vm1697_vm10, 1, %v2906_v43 }
 0x278   :  { %v1131_v3 = vpop.f32.mrf.mxu0 }
 0x279   :  { %v1303_v5 = vmul.f32 0.5, %v1131_v3  ;;  %v1154_v6 = vpop.f32.mrf.mxu1 }
 0x27a   :  { %v1304_v8 = vmul.f32 0.5, %v1154_v6 }
 0x27b   :  { %2724 = vtanh.f32 %v1303_v5 }
 0x27c   :  { %2726 = vtanh.f32 %v1304_v8 }
 0x27d   :  { %2728 = vtanh.f32 %v1295_v4  ;;  %v1700_v4 = vperm.slane %v3511_v2, 1 }
 0x27e   :  { %2730 = vtanh.f32 %v1296_v7 }
 0x27f   :  { %vm3519_vm12 = vcmp.eq.s32.totalorder %v1700_v4, 1 }
 0x280   :  { %v1174_v13 = vpop.f32.mrf.mxu2  ;;  %v1220_v15 = vpop.f32.mrf.mxu0 }
 0x281   :  { %v2725_v16 = vpop.eup %2724  ;;  %v1197_v17 = vpop.f32.mrf.mxu3  ;;  %v1297_v30 = vmul.f32 0.5, %v1174_v13  ;;  %v1299_v48 = vmul.f32 0.5, %v1220_v15 }
 0x282   :  { %v1243_v18 = vpop.f32.mrf.mxu1  ;;  %v2727_v19 = vpop.eup %2726  ;;  %v1335_v20 = vmul.f32 0.5, %v2725_v16  ;;  %v1298_v46 = vmul.f32 0.5, %v1197_v17 }
 0x283   :  { %v2729_v22 = vpop.eup %2728  ;;  %v1336_v25 = vmul.f32 0.5, %v2727_v19  ;;  %2732 = vtanh.f32 %v1297_v30  ;;  %v1300_v49 = vmul.f32 0.5, %v1243_v18 }
 0x284   :  { %v2731_v26 = vpop.eup %2730  ;;  %v1351_v28 = vadd.f32 0.5, %v1335_v20  ;;  %v1327_v32 = vmul.f32 0.5, %v2729_v22 }
 0x285   :  { %v1352_v29 = vadd.f32 0.5, %v1336_v25  ;;  %v1328_v34 = vmul.f32 0.5, %v2731_v26 }
 0x286   :  { %v1385_v31 = vsel %vm3399_vm2, %v1351_v28, 0.0  ;;  %v1343_v41 = vadd.f32 0.5, %v1327_v32 }
 0x287   :  { %1401 = vst [vmem:[#allocation2 + $0x40] sm:$0x3] %v1385_v31  ;;  %v1386_v35 = vsel %vm3403_vm3, %v1352_v29, 0.0  ;;  %v1344_v47 = vadd.f32 0.5, %v1328_v34 }
 0x288   :  { %v1177_v36 = vpop.f32.mrf.mxu2  ;;  %1402 = vst [vmem:[#allocation2 + $0x20] sm:$0x3] %v1386_v35  ;;  %v1223_v37 = vpop.f32.mrf.mxu0 }
 0x289   :  { %v1305_v38 = vmul.f32 0.5, %v1177_v36  ;;  %v1200_v12 = vpop.f32.mrf.mxu3  ;;  %v1307_v39 = vmul.f32 0.5, %v1223_v37  ;;  %v2733_v52 = vpop.eup %2732 }
 0x28a   :  { %v1246_v40 = vpop.f32.mrf.mxu1  ;;  %v1306_v42 = vmul.f32 0.5, %v1200_v12  ;;  %v1329_v17 = vmul.f32 0.5, %v2733_v52 }
 0x28b   :  { %v1308_v45 = vmul.f32 0.5, %v1246_v40  ;;  %2734 = vtanh.f32 %v1305_v38 }
 0x28c   :  { %2736 = vtanh.f32 %v1306_v42  ;;  %v1345_v30 = vadd.f32 0.5, %v1329_v17  ;;  %v1368_v42 = vperm.slane %v3395_v10, 7 }
 0x28d   :  { %2738 = vtanh.f32 %v1307_v39  ;;  %v1367_v39 = vperm.slane %v3395_v10, 6 }
 0x28e   :  { %2740 = vtanh.f32 %v1308_v45  ;;  %v1417_v51 = vld [vmem:[#allocation2 + $0x40] sm:$0x7]  ;;  %vm3477_vm9 = vcmp.eq.s32.totalorder %v1368_v42, 1 }
 0x28f   :  { %2742 = vtanh.f32 %v1298_v46  ;;  %2555 = vmatpush.msk.msra.mxu0 %vm72_vm0, %v1417_v51  ;;  %v1418_v23 = vld [vmem:[#allocation2 + $0x20] sm:$0x7]  ;;  %vm3469_vm8 = vcmp.eq.s32.totalorder %v1367_v39, 1 }
 0x290   :  { %v1266_v53 = vpop.f32.mrf.mxu2  ;;  %2744 = vtanh.f32 %v1299_v48  ;;  %2558 = vmatpush.msk.msra.mxu1 %vm72_vm0, %v1418_v23 }
 0x291   :  { %v2735_v21 = vpop.eup %2734  ;;  %v1289_v55 = vpop.f32.mrf.mxu3  ;;  %2746 = vtanh.f32 %v1300_v49  ;;  %2882 = vmatpush.msk.msra.mxu0 %vm3399_vm2, %v1343_v41  ;;  %v1301_v29 = vmul.f32 0.5, %v1266_v53 }
 0x292   :  { %v2737_v33 = vpop.eup %2736  ;;  %v1337_v57 = vmul.f32 0.5, %v2735_v21  ;;  %2883 = vmatpush.msk.msra.mxu1 %vm3403_vm3, %v1344_v47  ;;  %2556 = vmatmul.msk.f32.vlgmr.msra.gmra.mxu0 %vm65_vm1, %v3333_v50  ;;  %v1302_v32 = vmul.f32 0.5, %v1289_v55 }
 0x293   :  { %v2739_v59 = vpop.eup %2738  ;;  %v1338_v61 = vmul.f32 0.5, %v2737_v33  ;;  %2559 = vmatmul.msk.f32.vlgmr.msra.gmra.mxu1 %vm65_vm1, %v3333_v50 }
 0x294   :  { %v2741_v62 = vpop.eup %2740  ;;  %v1353_v63 = vadd.f32 0.5, %v1337_v57  ;;  %v1339_v0 = vmul.f32 0.5, %v2739_v59 }
 0x295   :  { %v2743_v1 = vpop.eup %2742  ;;  %v1354_v3 = vadd.f32 0.5, %v1338_v61  ;;  %v1340_v5 = vmul.f32 0.5, %v2741_v62 }
 0x296   :  { %v2745_v6 = vpop.eup %2744  ;;  %v1387_v8 = vsel %vm3425_vm4, %v1353_v63, 0.0  ;;  %v1355_v13 = vadd.f32 0.5, %v1339_v0  ;;  %v1330_v20 = vmul.f32 0.5, %v2743_v1 }
 0x297   :  { %v2747_v14 = vpop.eup %2746  ;;  %1403 = vst [vmem:[#allocation2 + $0x10] sm:$0x3] %v1387_v8  ;;  %v1388_v15 = vsel %vm3433_vm6, %v1354_v3, 0.0  ;;  %v1356_v16 = vadd.f32 0.5, %v1340_v5  ;;  %v1331_v22 = vmul.f32 0.5, %v2745_v6  ;;  %v1699_v3 = vperm.slane %v3511_v2, 0 }
 0x298   :  { %1404 = vst [vmem:[#allocation2 + $0x38] sm:$0x3] %v1388_v15  ;;  %v1269_v18 = vpop.f32.mrf.mxu2  ;;  %v1389_v19 = vsel %vm3429_vm5, %v1355_v13, 0.0  ;;  %v1332_v27 = vmul.f32 0.5, %v2747_v14  ;;  %v1346_v31 = vadd.f32 0.5, %v1330_v20 }
 0x299   :  { %v1309_v24 = vmul.f32 0.5, %v1269_v18  ;;  %v1292_v25 = vpop.f32.mrf.mxu3  ;;  %1405 = vst [vmem:[#allocation2 + $0x60] sm:$0x3] %v1389_v19  ;;  %v1390_v26 = vsel %vm3439_vm7, %v1356_v16, 0.0  ;;  %v1347_v34 = vadd.f32 0.5, %v1331_v22  ;;  %vm3515_vm11 = vcmp.eq.s32.totalorder %v1699_v3, 1 }
 0x29a   :  { %v1310_v28 = vmul.f32 0.5, %v1292_v25  ;;  %1406 = vst [vmem:[#allocation2 + $0x70] sm:$0x3] %v1390_v26  ;;  %2557 = vmatmul.msk.f32.gmra.mxu0 %vm65_vm1, %v3364_v60  ;;  %v1348_v35 = vadd.f32 0.5, %v1332_v27 }
 0x29b   :  { %2748 = vtanh.f32 %v1309_v24  ;;  %2560 = vmatmul.msk.f32.gmra.mxu1 %vm65_vm1, %v3364_v60 }
 0x29c   :  { %2750 = vtanh.f32 %v1310_v28 }
 0x29d   :  { %2752 = vtanh.f32 %v1301_v29 }
 0x29e   :  { %v1419_v36 = vld [vmem:[#allocation2 + $0x10] sm:$0x7]  ;;  %2754 = vtanh.f32 %v1302_v32 }
 0x29f   :  { %2561 = vmatpush.msk.msra.mxu2 %vm72_vm0, %v1419_v36  ;;  %v1420_v37 = vld [vmem:[#allocation2 + $0x38] sm:$0x7] }
 0x2a0   :  { %2564 = vmatpush.msk.msra.mxu3 %vm72_vm0, %v1420_v37  ;;  %v1421_v38 = vld [vmem:[#allocation2 + $0x60] sm:$0x7] }
 0x2a1   :  { %v2749_v12 = vpop.eup %2748  ;;  %2884 = vmatpush.msk.msra.mxu2 %vm3425_vm4, %v1345_v30  ;;  %2567 = vmatpush.msk.msrb.mxu0 %vm72_vm0, %v1421_v38  ;;  %v1422_v40 = vld [vmem:[#allocation2 + $0x70] sm:$0x7] }
 0x2a2   :  { %v2751_v41 = vpop.eup %2750  ;;  %v1341_v45 = vmul.f32 0.5, %v2749_v12  ;;  %2885 = vmatpush.msk.msra.mxu3 %vm3433_vm6, %v1346_v31  ;;  %2562 = vmatmul.msk.f32.vlgmr.msra.gmra.mxu2 %vm65_vm1, %v3333_v50 }
 0x2a3   :  { %v1342_v46 = vmul.f32 0.5, %v2751_v41  ;;  %2565 = vmatmul.msk.f32.vlgmr.msra.gmra.mxu3 %vm65_vm1, %v3333_v50  ;;  %2570 = vmatpush.msk.msrb.mxu1 %vm72_vm0, %v1422_v40  ;;  %v2753_v48 = vpop.eup %2752 }
 0x2a4   :  { %v1357_v47 = vadd.f32 0.5, %v1341_v45  ;;  %2886 = vmatpush.msk.msrb.mxu0 %vm3429_vm5, %v1347_v34  ;;  %v2755_v51 = vpop.eup %2754  ;;  %v1333_v21 = vmul.f32 0.5, %v2753_v48  ;;  %v1704_v48 = vperm.slane %v3511_v2, 5  ;;  %vm2035_vm5 = vcmp.ge.s32.totalorder %v3391_v9, 1 }
 0x2a5   :  { %v1358_v49 = vadd.f32 0.5, %v1342_v46  ;;  %2887 = vmatpush.msk.msrb.mxu1 %vm3439_vm7, %v1348_v35  ;;  %2568 = vmatmul.msk.f32.vlgmr.msrb.gmra.mxu0 %vm65_vm1, %v3333_v50  ;;  %v1334_v54 = vmul.f32 0.5, %v2755_v51  ;;  %v1703_v46 = vperm.slane %v3511_v2, 4 }
 0x2a6   :  { %v1391_v52 = vsel %vm3469_vm8, %v1357_v47, 0.0  ;;  %2571 = vmatmul.msk.f32.vlgmr.msrb.gmra.mxu1 %vm65_vm1, %v3333_v50  ;;  %v1349_v55 = vadd.f32 0.5, %v1333_v21  ;;  %vm3544_vm14 = vcmp.eq.s32.totalorder %v1704_v48, 1 }
 0x2a7   :  { %1407 = vst [vmem:[#allocation2 + $0x78] sm:$0x3] %v1391_v52  ;;  %v1392_v53 = vsel %vm3477_vm9, %v1358_v49, 0.0  ;;  %v1350_v44 = vadd.f32 0.5, %v1334_v54  ;;  %vm3539_vm13 = vcmp.eq.s32.totalorder %v1703_v46, 1 }
 0x2a8   :  { %1408 = vst [vmem:[#allocation2 + $0x28] sm:$0x3] %v1392_v53 }
 0x2aa   :  { %2563 = vmatmul.msk.f32.gmra.mxu2 %vm65_vm1, %v3364_v60 }
 0x2ab   :  { %2566 = vmatmul.msk.f32.gmra.mxu3 %vm65_vm1, %v3364_v60 }
 0x2ad   :  { %2569 = vmatmul.msk.f32.gmra.mxu0 %vm65_vm1, %v3364_v60 }
 0x2ae   :  { %v1423_v33 = vld [vmem:[#allocation2 + $0x78] sm:$0x7]  ;;  %2572 = vmatmul.msk.f32.gmra.mxu1 %vm65_vm1, %v3364_v60 }
 0x2af   :  { %2573 = vmatpush.msk.msrb.mxu2 %vm72_vm0, %v1423_v33  ;;  %v1424_v56 = vld [vmem:[#allocation2 + $0x28] sm:$0x7] }
 0x2b0   :  { %2576 = vmatpush.msk.msrb.mxu3 %vm72_vm0, %v1424_v56 }
 0x2b1   :  { %2888 = vmatpush.msk.msrb.mxu2 %vm3469_vm8, %v1349_v55  ;;  %v1701_v55 = vperm.slane %v3511_v2, 2 }
 0x2b2   :  { %2889 = vmatpush.msk.msrb.mxu3 %vm3477_vm9, %v1350_v44  ;;  %2574 = vmatmul.msk.f32.vlgmr.msrb.gmra.mxu2 %vm65_vm1, %v3333_v50 }
 0x2b3   :  { %2577 = vmatmul.msk.f32.vlgmr.msrb.gmra.mxu3 %vm65_vm1, %v3333_v50  ;;  %vm3555_vm15 = vcmp.eq.s32.totalorder %v1701_v55, 1 }
 0x2ba   :  { %2575 = vmatmul.msk.f32.gmra.mxu2 %vm65_vm1, %v3364_v60 }
 0x2bb   :  { %2578 = vmatmul.msk.f32.gmra.mxu3 %vm65_vm1, %v3364_v60 }
 0x30f   :  { %v1466_v57 = vpop.f32.mrf.mxu0 }
 0x310   :  { %v1489_v58 = vpop.f32.mrf.mxu1  ;;  %v1633_v61 = vmul.f32 0.5, %v1466_v57 }
 0x311   :  { %v1634_v0 = vmul.f32 0.5, %v1489_v58  ;;  %v1702_v58 = vperm.slane %v3511_v2, 3 }
 0x313   :  { %vm3561_vm2 = vcmp.eq.s32.totalorder %v1702_v58, 1  ;;  %v3627_v58 = vsel %vm2035_vm5, 1, %v2906_v43 }
 0x317   :  { %v1469_v59 = vpop.f32.mrf.mxu0 }
 0x318   :  { %v1641_v62 = vmul.f32 0.5, %v1469_v59  ;;  %v1492_v63 = vpop.f32.mrf.mxu1 }
 0x319   :  { %v1642_v1 = vmul.f32 0.5, %v1492_v63 }
 0x31a   :  { %2756 = vtanh.f32 %v1641_v62 }
 0x31b   :  { %2758 = vtanh.f32 %v1642_v1 }
 0x31c   :  { %2760 = vtanh.f32 %v1633_v61 }
 0x31d   :  { %2762 = vtanh.f32 %v1634_v0 }
 0x320   :  { %v2757_v5 = vpop.eup %2756 }
 0x321   :  { %v2759_v6 = vpop.eup %2758  ;;  %v1673_v7 = vmul.f32 0.5, %v2757_v5 }
 0x322   :  { %v2761_v8 = vpop.eup %2760  ;;  %v1674_v13 = vmul.f32 0.5, %v2759_v6  ;;  %v1558_v14 = vpop.f32.mrf.mxu0 }
 0x323   :  { %v2763_v15 = vpop.eup %2762  ;;  %v1689_v17 = vadd.f32 0.5, %v1673_v7  ;;  %v1581_v18 = vpop.f32.mrf.mxu1  ;;  %v1665_v22 = vmul.f32 0.5, %v2761_v8  ;;  %v1637_v28 = vmul.f32 0.5, %v1558_v14 }
 0x324   :  { %v1690_v19 = vadd.f32 0.5, %v1674_v13  ;;  %v1666_v26 = vmul.f32 0.5, %v2763_v15  ;;  %v1638_v31 = vmul.f32 0.5, %v1581_v18 }
 0x325   :  { %v1512_v20 = vpop.f32.mrf.mxu2  ;;  %v1723_v24 = vsel %vm3515_vm11, %v1689_v17, 0.0  ;;  %v1681_v29 = vadd.f32 0.5, %v1665_v22  ;;  %2764 = vtanh.f32 %v1637_v28 }
 0x326   :  { %v1535_v25 = vpop.f32.mrf.mxu3  ;;  %1739 = vst [vmem:[#allocation2 + $0x40] sm:$0x3] %v1723_v24  ;;  %v1724_v27 = vsel %vm3519_vm12, %v1690_v19, 0.0  ;;  %v1682_v30 = vadd.f32 0.5, %v1666_v26  ;;  %v1635_v42 = vmul.f32 0.5, %v1512_v20 }
 0x327   :  { %1740 = vst [vmem:[#allocation2 + $0x20] sm:$0x3] %v1724_v27  ;;  %v1636_v45 = vmul.f32 0.5, %v1535_v25 }
 0x32a   :  { %v1561_v32 = vpop.f32.mrf.mxu0 }
 0x32b   :  { %v1645_v34 = vmul.f32 0.5, %v1561_v32  ;;  %v1584_v35 = vpop.f32.mrf.mxu1  ;;  %v2765_v47 = vpop.eup %2764 }
 0x32c   :  { %v1646_v36 = vmul.f32 0.5, %v1584_v35  ;;  %v1669_v63 = vmul.f32 0.5, %v2765_v47  ;;  %v1705_v35 = vperm.slane %v3511_v2, 6 }
 0x32d   :  { %v1515_v37 = vpop.f32.mrf.mxu2  ;;  %2766 = vtanh.f32 %v1645_v34  ;;  %v1755_v38 = vld [vmem:[#allocation2 + $0x40] sm:$0x7] }
 0x32e   :  { %v1643_v12 = vmul.f32 0.5, %v1515_v37  ;;  %v1538_v39 = vpop.f32.mrf.mxu3  ;;  %2768 = vtanh.f32 %v1646_v36  ;;  %2579 = vmatpush.msk.msra.mxu0 %vm72_vm0, %v1755_v38  ;;  %v1756_v40 = vld [vmem:[#allocation2 + $0x20] sm:$0x7]  ;;  %v1685_v15 = vadd.f32 0.5, %v1669_v63  ;;  %v1706_v37 = vperm.slane %v3511_v2, 7 }
 0x32f   :  { %v1644_v41 = vmul.f32 0.5, %v1538_v39  ;;  %2770 = vtanh.f32 %v1638_v31  ;;  %2582 = vmatpush.msk.msra.mxu1 %vm72_vm0, %v1756_v40  ;;  %vm3591_vm3 = vcmp.eq.s32.totalorder %v1705_v35, 1  ;;  %v2041_v35 = vperm.slane %v3627_v58, 4 }
 0x330   :  { %2772 = vtanh.f32 %v1643_v12  ;;  %2890 = vmatpush.msk.msra.mxu0 %vm3515_vm11, %v1681_v29  ;;  %vm3595_vm4 = vcmp.eq.s32.totalorder %v1706_v37, 1  ;;  %v2042_v37 = vperm.slane %v3627_v58, 5 }
 0x331   :  { %2774 = vtanh.f32 %v1644_v41  ;;  %2891 = vmatpush.msk.msra.mxu1 %vm3519_vm12, %v1682_v30  ;;  %2580 = vmatmul.msk.f32.vlgmr.msra.gmra.mxu0 %vm65_vm1, %v3333_v50  ;;  %vm3655_vm8 = vcmp.eq.s32.totalorder %v2041_v35, 1 }
 0x332   :  { %2583 = vmatmul.msk.f32.vlgmr.msra.gmra.mxu1 %vm65_vm1, %v3333_v50  ;;  %2776 = vtanh.f32 %v1635_v42  ;;  %vm3659_vm9 = vcmp.eq.s32.totalorder %v2042_v37, 1 }
 0x333   :  { %v2767_v10 = vpop.eup %2766  ;;  %2778 = vtanh.f32 %v1636_v45 }
 0x334   :  { %v2769_v49 = vpop.eup %2768  ;;  %v1677_v51 = vmul.f32 0.5, %v2767_v10 }
 0x335   :  { %v2771_v23 = vpop.eup %2770  ;;  %v1604_v52 = vpop.f32.mrf.mxu2  ;;  %v1678_v21 = vmul.f32 0.5, %v2769_v49 }
 0x336   :  { %v2773_v54 = vpop.eup %2772  ;;  %v1627_v44 = vpop.f32.mrf.mxu3  ;;  %v1693_v56 = vadd.f32 0.5, %v1677_v51  ;;  %v1670_v3 = vmul.f32 0.5, %v2771_v23  ;;  %v1639_v25 = vmul.f32 0.5, %v1604_v52 }
 0x337   :  { %v2775_v57 = vpop.eup %2774  ;;  %v1675_v59 = vmul.f32 0.5, %v2773_v54  ;;  %v1694_v61 = vadd.f32 0.5, %v1678_v21  ;;  %v1640_v28 = vmul.f32 0.5, %v1627_v44 }
 0x338   :  { %v1676_v62 = vmul.f32 0.5, %v2775_v57  ;;  %v1727_v0 = vsel %vm3539_vm13, %v1693_v56, 0.0  ;;  %v2777_v5 = vpop.eup %2776  ;;  %v1686_v17 = vadd.f32 0.5, %v1670_v3 }
 0x339   :  { %v1691_v1 = vadd.f32 0.5, %v1675_v59  ;;  %1743 = vst [vmem:[#allocation2 + $0x60] sm:$0x3] %v1727_v0  ;;  %v1728_v4 = vsel %vm3544_vm14, %v1694_v61, 0.0  ;;  %2581 = vmatmul.msk.f32.gmra.mxu0 %vm65_vm1, %v3364_v60  ;;  %v2779_v8 = vpop.eup %2778  ;;  %v1667_v16 = vmul.f32 0.5, %v2777_v5  ;;  %v2037_v59 = vperm.slane %v3627_v58, 0 }
 0x33a   :  { %v1692_v7 = vadd.f32 0.5, %v1676_v62  ;;  %1744 = vst [vmem:[#allocation2 + $0x70] sm:$0x3] %v1728_v4  ;;  %2584 = vmatmul.msk.f32.gmra.mxu1 %vm65_vm1, %v3364_v60  ;;  %v1668_v19 = vmul.f32 0.5, %v2779_v8  ;;  %v2038_v61 = vperm.slane %v3627_v58, 1 }
 0x33b   :  { %v1725_v13 = vsel %vm3555_vm15, %v1691_v1, 0.0  ;;  %v1683_v27 = vadd.f32 0.5, %v1667_v16  ;;  %vm3631_vm6 = vcmp.eq.s32.totalorder %v2037_v59, 1 }
 0x33c   :  { %1741 = vst [vmem:[#allocation2 + $0x10] sm:$0x3] %v1725_v13  ;;  %v1726_v14 = vsel %vm3561_vm2, %v1692_v7, 0.0  ;;  %v1684_v30 = vadd.f32 0.5, %v1668_v19  ;;  %vm3635_vm7 = vcmp.eq.s32.totalorder %v2038_v61, 1 }
 0x33d   :  { %1742 = vst [vmem:[#allocation2 + $0x38] sm:$0x3] %v1726_v14  ;;  %v1607_v18 = vpop.f32.mrf.mxu2 }
 0x33e   :  { %v1647_v20 = vmul.f32 0.5, %v1607_v18  ;;  %v1630_v22 = vpop.f32.mrf.mxu3 }
 0x33f   :  { %v1648_v24 = vmul.f32 0.5, %v1630_v22 }
 0x340   :  { %2780 = vtanh.f32 %v1647_v20  ;;  %v1759_v26 = vld [vmem:[#allocation2 + $0x60] sm:$0x7] }
 0x341   :  { %2782 = vtanh.f32 %v1648_v24  ;;  %2591 = vmatpush.msk.msrb.mxu0 %vm72_vm0, %v1759_v26  ;;  %v1760_v29 = vld [vmem:[#allocation2 + $0x70] sm:$0x7] }
 0x342   :  { %2594 = vmatpush.msk.msrb.mxu1 %vm72_vm0, %v1760_v29  ;;  %2784 = vtanh.f32 %v1639_v25 }
 0x343   :  { %v1757_v32 = vld [vmem:[#allocation2 + $0x10] sm:$0x7]  ;;  %2892 = vmatpush.msk.msrb.mxu0 %vm3539_vm13, %v1685_v15  ;;  %2786 = vtanh.f32 %v1640_v28 }
 0x344   :  { %2585 = vmatpush.msk.msra.mxu2 %vm72_vm0, %v1757_v32  ;;  %v1758_v31 = vld [vmem:[#allocation2 + $0x38] sm:$0x7]  ;;  %2893 = vmatpush.msk.msrb.mxu1 %vm3544_vm14, %v1686_v17 }
 0x345   :  { %2588 = vmatpush.msk.msra.mxu3 %vm72_vm0, %v1758_v31  ;;  %2592 = vmatmul.msk.f32.vlgmr.msrb.gmra.mxu0 %vm65_vm1, %v3333_v50 }
 0x346   :  { %v2781_v34 = vpop.eup %2780  ;;  %2894 = vmatpush.msk.msra.mxu2 %vm3555_vm15, %v1683_v27  ;;  %2595 = vmatmul.msk.f32.vlgmr.msrb.gmra.mxu1 %vm65_vm1, %v3333_v50 }
 0x347   :  { %v2783_v36 = vpop.eup %2782  ;;  %v1679_v38 = vmul.f32 0.5, %v2781_v34  ;;  %2895 = vmatpush.msk.msra.mxu3 %vm3561_vm2, %v1684_v30  ;;  %2586 = vmatmul.msk.f32.vlgmr.msra.gmra.mxu2 %vm65_vm1, %v3333_v50 }
 0x348   :  { %v1680_v12 = vmul.f32 0.5, %v2783_v36  ;;  %2589 = vmatmul.msk.f32.vlgmr.msra.gmra.mxu3 %vm65_vm1, %v3333_v50  ;;  %v2785_v40 = vpop.eup %2784 }
 0x349   :  { %v1695_v39 = vadd.f32 0.5, %v1679_v38  ;;  %v2787_v45 = vpop.eup %2786  ;;  %v1671_v48 = vmul.f32 0.5, %v2785_v40 }
 0x34a   :  { %v1696_v42 = vadd.f32 0.5, %v1680_v12  ;;  %v1672_v10 = vmul.f32 0.5, %v2787_v45 }
 0x34b   :  { %v1729_v46 = vsel %vm3591_vm3, %v1695_v39, 0.0  ;;  %v1687_v49 = vadd.f32 0.5, %v1671_v48 }
 0x34c   :  { %1745 = vst [vmem:[#allocation2 + $0x78] sm:$0x3] %v1729_v46  ;;  %v1730_v47 = vsel %vm3595_vm4, %v1696_v42, 0.0  ;;  %v1688_v51 = vadd.f32 0.5, %v1672_v10  ;;  %v2857_v46 = vld [vmem:[%s3863_s2] sm:$0xff] }
 0x34d   :  { %1746 = vst [vmem:[#allocation2 + $0x28] sm:$0x3] %v1730_v47  ;;  %2593 = vmatmul.msk.f32.gmra.mxu0 %vm65_vm1, %v3364_v60 }
 0x34e   :  { %2596 = vmatmul.msk.f32.gmra.mxu1 %vm65_vm1, %v3364_v60 }
 0x34f   :  { %2587 = vmatmul.msk.f32.gmra.mxu2 %vm65_vm1, %v3364_v60 }
 0x350   :  { %2590 = vmatmul.msk.f32.gmra.mxu3 %vm65_vm1, %v3364_v60 }
 0x353   :  { %v1761_v23 = vld [vmem:[#allocation2 + $0x78] sm:$0x7] }
 0x354   :  { %2597 = vmatpush.msk.msrb.mxu2 %vm72_vm0, %v1761_v23  ;;  %v1762_v52 = vld [vmem:[#allocation2 + $0x28] sm:$0x7] }
 0x355   :  { %2600 = vmatpush.msk.msrb.mxu3 %vm72_vm0, %v1762_v52  ;;  %v2039_v52 = vperm.slane %v3627_v58, 2 }
 0x356   :  { %2896 = vmatpush.msk.msrb.mxu2 %vm3591_vm3, %v1687_v49 }
 0x357   :  { %2897 = vmatpush.msk.msrb.mxu3 %vm3595_vm4, %v1688_v51  ;;  %2598 = vmatmul.msk.f32.vlgmr.msrb.gmra.mxu2 %vm65_vm1, %v3333_v50  ;;  %vm3673_vm10 = vcmp.eq.s32.totalorder %v2039_v52, 1 }
 0x358   :  { %2601 = vmatmul.msk.f32.vlgmr.msrb.gmra.mxu3 %vm65_vm1, %v3333_v50 }
 0x35f   :  { %2599 = vmatmul.msk.f32.gmra.mxu2 %vm65_vm1, %v3364_v60 }
 0x360   :  { %2602 = vmatmul.msk.f32.gmra.mxu3 %vm65_vm1, %v3364_v60 }
 0x3ae   :  { %v1804_v53 = vpop.f32.mrf.mxu0 }
 0x3af   :  { %v1827_v21 = vpop.f32.mrf.mxu1  ;;  %v1971_v55 = vmul.f32 0.5, %v1804_v53 }
 0x3b0   :  { %v1972_v56 = vmul.f32 0.5, %v1827_v21 }
 0x3b6   :  { %v1807_v54 = vpop.f32.mrf.mxu0 }
 0x3b7   :  { %v1979_v44 = vmul.f32 0.5, %v1807_v54  ;;  %v1830_v33 = vpop.f32.mrf.mxu1 }
 0x3b8   :  { %v1980_v57 = vmul.f32 0.5, %v1830_v33 }
 0x3b9   :  { %2788 = vtanh.f32 %v1979_v44  ;;  %v2040_v44 = vperm.slane %v3627_v58, 3 }
 0x3ba   :  { %2790 = vtanh.f32 %v1980_v57 }
 0x3bb   :  { %2792 = vtanh.f32 %v1971_v55  ;;  %vm3677_vm11 = vcmp.eq.s32.totalorder %v2040_v44, 1 }
 0x3bc   :  { %2794 = vtanh.f32 %v1972_v56 }
 0x3bf   :  { %v2789_v62 = vpop.eup %2788 }
 0x3c0   :  { %v2791_v63 = vpop.eup %2790  ;;  %v2011_v0 = vmul.f32 0.5, %v2789_v62 }
 0x3c1   :  { %v2793_v1 = vpop.eup %2792  ;;  %v2012_v3 = vmul.f32 0.5, %v2791_v63 }
 0x3c2   :  { %v2795_v4 = vpop.eup %2794  ;;  %v2027_v6 = vadd.f32 0.5, %v2011_v0  ;;  %v1896_v7 = vpop.f32.mrf.mxu0  ;;  %v2003_v13 = vmul.f32 0.5, %v2793_v1 }
 0x3c3   :  { %v2028_v8 = vadd.f32 0.5, %v2012_v3  ;;  %v1919_v11 = vpop.f32.mrf.mxu1  ;;  %v2004_v15 = vmul.f32 0.5, %v2795_v4  ;;  %v1975_v28 = vmul.f32 0.5, %v1896_v7 }
 0x3c4   :  { %v2061_v14 = vsel %vm3631_vm6, %v2027_v6, 0.0  ;;  %v2019_v17 = vadd.f32 0.5, %v2003_v13  ;;  %v1976_v30 = vmul.f32 0.5, %v1919_v11 }
 0x3c5   :  { %2077 = vst [vmem:[#allocation2 + $0x40] sm:$0x3] %v2061_v14  ;;  %v2062_v16 = vsel %vm3635_vm7, %v2028_v8, 0.0  ;;  %v2020_v18 = vadd.f32 0.5, %v2004_v15 }
 0x3c6   :  { %2078 = vst [vmem:[#allocation2 + $0x20] sm:$0x3] %v2062_v16 }
 0x3ca   :  { %v1850_v19 = vpop.f32.mrf.mxu2  ;;  %v1899_v20 = vpop.f32.mrf.mxu0 }
 0x3cb   :  { %v1873_v22 = vpop.f32.mrf.mxu3  ;;  %v1983_v24 = vmul.f32 0.5, %v1899_v20  ;;  %v1922_v25 = vpop.f32.mrf.mxu1  ;;  %v1973_v12 = vmul.f32 0.5, %v1850_v19 }
 0x3cc   :  { %v1984_v26 = vmul.f32 0.5, %v1922_v25  ;;  %v2093_v27 = vld [vmem:[#allocation2 + $0x40] sm:$0x7]  ;;  %v1974_v40 = vmul.f32 0.5, %v1873_v22  ;;  %v2043_v25 = vperm.slane %v3627_v58, 6 }
 0x3cd   :  { %2603 = vmatpush.msk.msra.mxu0 %vm72_vm0, %v2093_v27  ;;  %v2094_v29 = vld [vmem:[#allocation2 + $0x20] sm:$0x7]  ;;  %2796 = vtanh.f32 %v1983_v24  ;;  %v2044_v27 = vperm.slane %v3627_v58, 7 }
 0x3ce   :  { %2606 = vmatpush.msk.msra.mxu1 %vm72_vm0, %v2094_v29  ;;  %2798 = vtanh.f32 %v1984_v26  ;;  %vm3710_vm12 = vcmp.eq.s32.totalorder %v2043_v25, 1 }
 0x3cf   :  { %2898 = vmatpush.msk.msra.mxu0 %vm3631_vm6, %v2019_v17  ;;  %2800 = vtanh.f32 %v1975_v28  ;;  %vm3715_vm13 = vcmp.eq.s32.totalorder %v2044_v27, 1 }
 0x3d0   :  { %2899 = vmatpush.msk.msra.mxu1 %vm3635_vm7, %v2020_v18  ;;  %2604 = vmatmul.msk.f32.vlgmr.msra.gmra.mxu0 %vm65_vm1, %v3333_v50  ;;  %2802 = vtanh.f32 %v1976_v30  ;;  %v2855_v18 = vld [vmem:[%s3862_s1] sm:$0xff] }
 0x3d1   :  { %2607 = vmatmul.msk.f32.vlgmr.msra.gmra.mxu1 %vm65_vm1, %v3333_v50 }
 0x3d2   :  { %v1853_v32 = vpop.f32.mrf.mxu2 }
 0x3d3   :  { %v1981_v31 = vmul.f32 0.5, %v1853_v32  ;;  %v1876_v34 = vpop.f32.mrf.mxu3  ;;  %v2797_v38 = vpop.eup %2796  ;;  %v2856_v32 = vld [vmem:[%s3862_s1 + $0x8] sm:$0x3] }
 0x3d4   :  { %v1982_v36 = vmul.f32 0.5, %v1876_v34  ;;  %v2799_v39 = vpop.eup %2798  ;;  %v2015_v41 = vmul.f32 0.5, %v2797_v38 }
 0x3d5   :  { %2804 = vtanh.f32 %v1981_v31  ;;  %v2801_v42 = vpop.eup %2800  ;;  %v2016_v50 = vmul.f32 0.5, %v2799_v39 }
 0x3d6   :  { %2806 = vtanh.f32 %v1982_v36  ;;  %v2803_v2 = vpop.eup %2802  ;;  %v2031_v47 = vadd.f32 0.5, %v2015_v41  ;;  %v2007_v10 = vmul.f32 0.5, %v2801_v42 }
 0x3d7   :  { %2808 = vtanh.f32 %v1973_v12  ;;  %v2032_v48 = vadd.f32 0.5, %v2016_v50  ;;  %v2008_v53 = vmul.f32 0.5, %v2803_v2 }
 0x3d8   :  { %2605 = vmatmul.msk.f32.gmra.mxu0 %vm65_vm1, %v3364_v60  ;;  %2810 = vtanh.f32 %v1974_v40  ;;  %v2065_v51 = vsel %vm3655_vm8, %v2031_v47, 0.0  ;;  %v2023_v57 = vadd.f32 0.5, %v2007_v10 }
 0x3d9   :  { %2608 = vmatmul.msk.f32.gmra.mxu1 %vm65_vm1, %v3364_v60  ;;  %2081 = vst [vmem:[#allocation2 + $0x60] sm:$0x3] %v2065_v51  ;;  %v2066_v54 = vsel %vm3659_vm9, %v2032_v48, 0.0  ;;  %v2024_v63 = vadd.f32 0.5, %v2008_v53 }
 0x3da   :  { %v1942_v49 = vpop.f32.mrf.mxu2  ;;  %2082 = vst [vmem:[#allocation2 + $0x70] sm:$0x3] %v2066_v54 }
 0x3db   :  { %v2805_v23 = vpop.eup %2804  ;;  %v1965_v21 = vpop.f32.mrf.mxu3  ;;  %v1977_v15 = vmul.f32 0.5, %v1942_v49 }
 0x3dc   :  { %v2807_v55 = vpop.eup %2806  ;;  %v2013_v33 = vmul.f32 0.5, %v2805_v23  ;;  %v1978_v17 = vmul.f32 0.5, %v1965_v21 }
 0x3dd   :  { %v2014_v60 = vmul.f32 0.5, %v2807_v55  ;;  %v2809_v59 = vpop.eup %2808 }
 0x3de   :  { %v2029_v56 = vadd.f32 0.5, %v2013_v33  ;;  %v2811_v0 = vpop.eup %2810  ;;  %v2005_v4 = vmul.f32 0.5, %v2809_v59 }
 0x3df   :  { %v2030_v62 = vadd.f32 0.5, %v2014_v60  ;;  %v2006_v7 = vmul.f32 0.5, %v2811_v0 }
 0x3e0   :  { %v2063_v9 = vsel %vm3673_vm10, %v2029_v56, 0.0  ;;  %v2097_v6 = vld [vmem:[#allocation2 + $0x60] sm:$0x7]  ;;  %v2021_v16 = vadd.f32 0.5, %v2005_v4 }
 0x3e1   :  { %2079 = vst [vmem:[#allocation2 + $0x10] sm:$0x3] %v2063_v9  ;;  %v2064_v3 = vsel %vm3677_vm11, %v2030_v62, 0.0  ;;  %2615 = vmatpush.msk.msrb.mxu0 %vm72_vm0, %v2097_v6  ;;  %v2098_v13 = vld [vmem:[#allocation2 + $0x70] sm:$0x7]  ;;  %v2022_v19 = vadd.f32 0.5, %v2006_v7 }
 0x3e2   :  { %2080 = vst [vmem:[#allocation2 + $0x38] sm:$0x3] %v2064_v3  ;;  %v1945_v5 = vpop.f32.mrf.mxu2  ;;  %2618 = vmatpush.msk.msrb.mxu1 %vm72_vm0, %v2098_v13 }
 0x3e3   :  { %v1985_v8 = vmul.f32 0.5, %v1945_v5  ;;  %v1968_v11 = vpop.f32.mrf.mxu3  ;;  %2900 = vmatpush.msk.msrb.mxu0 %vm3655_vm8, %v2023_v57 }
 0x3e4   :  { %v1986_v14 = vmul.f32 0.5, %v1968_v11  ;;  %2901 = vmatpush.msk.msrb.mxu1 %vm3659_vm9, %v2024_v63  ;;  %2616 = vmatmul.msk.f32.vlgmr.msrb.gmra.mxu0 %vm65_vm1, %v2855_v18 }
 0x3e5   :  { %2812 = vtanh.f32 %v1985_v8  ;;  %2619 = vmatmul.msk.f32.vlgmr.msrb.gmra.mxu1 %vm65_vm1, %v2855_v18 }
 0x3e6   :  { %2814 = vtanh.f32 %v1986_v14 }
 0x3e7   :  { %2816 = vtanh.f32 %v1977_v15 }
 0x3e8   :  { %v2095_v20 = vld [vmem:[#allocation2 + $0x10] sm:$0x7]  ;;  %2818 = vtanh.f32 %v1978_v17 }
 0x3e9   :  { %2609 = vmatpush.msk.msra.mxu2 %vm72_vm0, %v2095_v20  ;;  %v2096_v22 = vld [vmem:[#allocation2 + $0x38] sm:$0x7] }
 0x3ea   :  { %2612 = vmatpush.msk.msra.mxu3 %vm72_vm0, %v2096_v22 }
 0x3eb   :  { %v2813_v24 = vpop.eup %2812  ;;  %2902 = vmatpush.msk.msra.mxu2 %vm3673_vm10, %v2021_v16 }
 0x3ec   :  { %v2815_v26 = vpop.eup %2814  ;;  %v2017_v28 = vmul.f32 0.5, %v2813_v24  ;;  %2903 = vmatpush.msk.msra.mxu3 %vm3677_vm11, %v2022_v19  ;;  %2610 = vmatmul.msk.f32.vlgmr.msra.gmra.mxu2 %vm65_vm1, %v2855_v18 }
 0x3ed   :  { %v2018_v29 = vmul.f32 0.5, %v2815_v26  ;;  %2613 = vmatmul.msk.f32.vlgmr.msra.gmra.mxu3 %vm65_vm1, %v2855_v18  ;;  %2617 = vmatmul.msk.f32.gmra.mxu0 %vm65_vm1, %v2856_v32  ;;  %v2817_v31 = vpop.eup %2816 }
 0x3ee   :  { %v2033_v30 = vadd.f32 0.5, %v2017_v28  ;;  %2620 = vmatmul.msk.f32.gmra.mxu1 %vm65_vm1, %v2856_v32  ;;  %v2819_v35 = vpop.eup %2818  ;;  %v2009_v12 = vmul.f32 0.5, %v2817_v31 }
 0x3ef   :  { %v2034_v58 = vadd.f32 0.5, %v2018_v29  ;;  %v2010_v39 = vmul.f32 0.5, %v2819_v35 }
 0x3f0   :  { %v2067_v37 = vsel %vm3710_vm12, %v2033_v30, 0.0  ;;  %v2025_v40 = vadd.f32 0.5, %v2009_v12 }
 0x3f1   :  { %2083 = vst [vmem:[#allocation2 + $0x78] sm:$0x3] %v2067_v37  ;;  %v2068_v38 = vsel %vm3715_vm13, %v2034_v58, 0.0  ;;  %v2026_v41 = vadd.f32 0.5, %v2010_v39 }
 0x3f2   :  { %2084 = vst [vmem:[#allocation2 + $0x28] sm:$0x3] %v2068_v38 }
 0x3f4   :  { %2611 = vmatmul.msk.f32.gmra.mxu2 %vm65_vm1, %v2856_v32 }
 0x3f5   :  { %2614 = vmatmul.msk.f32.gmra.mxu3 %vm65_vm1, %v2856_v32 }
 0x3f8   :  { %v2099_v42 = vld [vmem:[#allocation2 + $0x78] sm:$0x7] }
 0x3f9   :  { %2621 = vmatpush.msk.msrb.mxu2 %vm72_vm0, %v2099_v42  ;;  %v2100_v45 = vld [vmem:[#allocation2 + $0x28] sm:$0x7] }
 0x3fa   :  { %2624 = vmatpush.msk.msrb.mxu3 %vm72_vm0, %v2100_v45  ;;  %vm2373_vm0 = vcmp.ge.s32.totalorder %v2857_v46, 0 }
 0x3fb   :  { %2904 = vmatpush.msk.msrb.mxu2 %vm3710_vm12, %v2025_v40  ;;  %v3739_v10 = vsel %vm2373_vm0, 1, %v2906_v43 }
 0x3fc   :  { %2905 = vmatpush.msk.msrb.mxu3 %vm3715_vm13, %v2026_v41  ;;  %2622 = vmatmul.msk.f32.vlgmr.msrb.gmra.mxu2 %vm65_vm1, %v2855_v18  ;;  %v2375_v49 = vperm.slane %v3739_v10, 0  ;;  %v2376_v51 = vperm.slane %v3739_v10, 1  ;;  %v2380_v19 = vperm.slane %v3739_v10, 5  ;;  %v2377_v38 = vperm.slane %v3739_v10, 2 }
 0x3fd   :  { %2625 = vmatmul.msk.f32.vlgmr.msrb.gmra.mxu3 %vm65_vm1, %v2855_v18  ;;  %v2379_v18 = vperm.slane %v3739_v10, 4  ;;  %v2378_v39 = vperm.slane %v3739_v10, 3 }
 0x3fe   :  { %vm3747_vm14 = vcmp.eq.s32.totalorder %v2376_v51, 1  ;;  %vm3771_vm2 = vcmp.eq.s32.totalorder %v2380_v19, 1  ;;  %vm3793_vm3 = vcmp.eq.s32.totalorder %v2377_v38, 1 }
 0x3ff   :  { %vm3767_vm15 = vcmp.eq.s32.totalorder %v2379_v18, 1  ;;  %vm3797_vm4 = vcmp.eq.s32.totalorder %v2378_v39, 1 }
 0x404   :  { %2623 = vmatmul.msk.f32.gmra.mxu2 %vm65_vm1, %v2856_v32 }
 0x405   :  { %2626 = vmatmul.msk.f32.gmra.mxu3 %vm65_vm1, %v2856_v32  ;;  %vm3743_vm1 = vcmp.eq.s32.totalorder %v2375_v49, 1 }
 0x44d   :  { %v2142_v50 = vpop.f32.mrf.mxu0 }
 0x44e   :  { %v2309_v2 = vmul.f32 0.5, %v2142_v50  ;;  %v2165_v47 = vpop.f32.mrf.mxu1 }
 0x44f   :  { %v2310_v48 = vmul.f32 0.5, %v2165_v47 }
 0x450   :  { %2820 = vtanh.f32 %v2309_v2 }
 0x451   :  { %2822 = vtanh.f32 %v2310_v48 }
 0x455   :  { %v2145_v33 = vpop.f32.mrf.mxu0 }
 0x456   :  { %v2821_v23 = vpop.eup %2820  ;;  %v2168_v60 = vpop.f32.mrf.mxu1  ;;  %v2317_v57 = vmul.f32 0.5, %v2145_v33 }
 0x457   :  { %v2823_v52 = vpop.eup %2822  ;;  %v2341_v53 = vmul.f32 0.5, %v2821_v23  ;;  %v2318_v61 = vmul.f32 0.5, %v2168_v60 }
 0x458   :  { %v2342_v54 = vmul.f32 0.5, %v2823_v52  ;;  %2824 = vtanh.f32 %v2317_v57 }
 0x459   :  { %v2357_v55 = vadd.f32 0.5, %v2341_v53  ;;  %2826 = vtanh.f32 %v2318_v61 }
 0x45a   :  { %v2358_v43 = vadd.f32 0.5, %v2342_v54 }
 0x45b   :  { %v2391_v56 = vsel %vm3743_vm1, %v2357_v55, 0.0 }
 0x45c   :  { %v2392_v59 = vsel %vm3747_vm14, %v2358_v43, 0.0  ;;  %2439 = vst [vmem:[%s3864_s3] sm:$0xff] %v2391_v56 }
 0x45d   :  { %2440 = vst [vmem:[%s3864_s3 + $0x8] sm:$0xff] %v2392_v59 }
 0x45e   :  { %v2825_v62 = vpop.eup %2824 }
 0x45f   :  { %v2827_v0 = vpop.eup %2826  ;;  %v2349_v1 = vmul.f32 0.5, %v2825_v62 }
 0x460   :  { %v2350_v4 = vmul.f32 0.5, %v2827_v0 }
 0x461   :  { %v2234_v63 = vpop.f32.mrf.mxu0  ;;  %v2365_v6 = vadd.f32 0.5, %v2349_v1 }
 0x462   :  { %v2313_v9 = vmul.f32 0.5, %v2234_v63  ;;  %v2257_v3 = vpop.f32.mrf.mxu1  ;;  %v2366_v7 = vadd.f32 0.5, %v2350_v4 }
 0x463   :  { %v2314_v5 = vmul.f32 0.5, %v2257_v3  ;;  %v2399_v8 = vsel %vm3743_vm1, %v2365_v6, 0.0 }
 0x464   :  { %2828 = vtanh.f32 %v2313_v9  ;;  %2415 = vst [vmem:[#allocation2 + $0x40] sm:$0x3] %v2399_v8  ;;  %v2400_v11 = vsel %vm3747_vm14, %v2366_v7, 0.0  ;;  %v2381_v7 = vperm.slane %v3739_v10, 6 }
 0x465   :  { %2830 = vtanh.f32 %v2314_v5  ;;  %2416 = vst [vmem:[#allocation2 + $0x20] sm:$0x3] %v2400_v11 }
 0x466   :  { %vm3827_vm5 = vcmp.eq.s32.totalorder %v2381_v7, 1 }
 0x46a   :  { %v2829_v13 = vpop.eup %2828  ;;  %v2237_v14 = vpop.f32.mrf.mxu0 }
 0x46b   :  { %v2260_v15 = vpop.f32.mrf.mxu1  ;;  %v2831_v16 = vpop.eup %2830  ;;  %v2345_v17 = vmul.f32 0.5, %v2829_v13  ;;  %v2321_v22 = vmul.f32 0.5, %v2237_v14  ;;  %v2431_v32 = vld [vmem:[#allocation2 + $0x40] sm:$0x3]  ;;  %v2382_v13 = vperm.slane %v3739_v10, 7 }
 0x46c   :  { %v2346_v20 = vmul.f32 0.5, %v2831_v16  ;;  %v2322_v24 = vmul.f32 0.5, %v2260_v15  ;;  %2447 = vst [vmem:[%s3864_s3 + $0x40] sm:$0x3] %v2431_v32  ;;  %v2432_v58 = vld [vmem:[#allocation2 + $0x20] sm:$0x3] }
 0x46d   :  { %v2361_v26 = vadd.f32 0.5, %v2345_v17  ;;  %2832 = vtanh.f32 %v2321_v22  ;;  %2448 = vst [vmem:[%s3864_s3 + $0x48] sm:$0x3] %v2432_v58  ;;  %vm3831_vm6 = vcmp.eq.s32.totalorder %v2382_v13, 1 }
 0x46e   :  { %v2362_v31 = vadd.f32 0.5, %v2346_v20  ;;  %2834 = vtanh.f32 %v2322_v24 }
 0x46f   :  { %v2188_v25 = vpop.f32.mrf.mxu2  ;;  %v2395_v35 = vsel %vm3767_vm15, %v2361_v26, 0.0 }
 0x470   :  { %v2311_v29 = vmul.f32 0.5, %v2188_v25  ;;  %v2211_v30 = vpop.f32.mrf.mxu3  ;;  %v2396_v36 = vsel %vm3771_vm2, %v2362_v31, 0.0  ;;  %2443 = vst [vmem:[%s3864_s3 + $0x20] sm:$0xff] %v2395_v35 }
 0x471   :  { %v2312_v34 = vmul.f32 0.5, %v2211_v30  ;;  %2444 = vst [vmem:[%s3864_s3 + $0x28] sm:$0xff] %v2396_v36 }
 0x472   :  { %2836 = vtanh.f32 %v2311_v29 }
 0x473   :  { %2838 = vtanh.f32 %v2312_v34  ;;  %v2833_v37 = vpop.eup %2832 }
 0x474   :  { %v2835_v12 = vpop.eup %2834  ;;  %v2353_v41 = vmul.f32 0.5, %v2833_v37 }
 0x475   :  { %v2354_v2 = vmul.f32 0.5, %v2835_v12 }
 0x476   :  { %v2369_v49 = vadd.f32 0.5, %v2353_v41 }
 0x477   :  { %v2191_v40 = vpop.f32.mrf.mxu2  ;;  %v2370_v52 = vadd.f32 0.5, %v2354_v2 }
 0x478   :  { %v2837_v42 = vpop.eup %2836  ;;  %v2319_v45 = vmul.f32 0.5, %v2191_v40  ;;  %v2214_v50 = vpop.f32.mrf.mxu3  ;;  %v2403_v54 = vsel %vm3767_vm15, %v2369_v49, 0.0 }
 0x479   :  { %v2839_v46 = vpop.eup %2838  ;;  %v2343_v47 = vmul.f32 0.5, %v2837_v42  ;;  %v2320_v48 = vmul.f32 0.5, %v2214_v50  ;;  %2419 = vst [vmem:[#allocation2 + $0x60] sm:$0x3] %v2403_v54  ;;  %v2404_v44 = vsel %vm3771_vm2, %v2370_v52, 0.0 }
 0x47a   :  { %v2344_v23 = vmul.f32 0.5, %v2839_v46  ;;  %2840 = vtanh.f32 %v2319_v45  ;;  %2420 = vst [vmem:[#allocation2 + $0x70] sm:$0x3] %v2404_v44 }
 0x47b   :  { %v2359_v53 = vadd.f32 0.5, %v2343_v47  ;;  %2842 = vtanh.f32 %v2320_v48 }
 0x47c   :  { %v2360_v55 = vadd.f32 0.5, %v2344_v23 }
 0x47d   :  { %v2393_v43 = vsel %vm3793_vm3, %v2359_v53, 0.0 }
 0x47e   :  { %v2394_v33 = vsel %vm3797_vm4, %v2360_v55, 0.0  ;;  %2441 = vst [vmem:[%s3864_s3 + $0x10] sm:$0xff] %v2393_v43 }
 0x47f   :  { %v2280_v60 = vpop.f32.mrf.mxu2  ;;  %2442 = vst [vmem:[%s3864_s3 + $0x18] sm:$0xff] %v2394_v33 }
 0x480   :  { %v2841_v56 = vpop.eup %2840  ;;  %v2315_v57 = vmul.f32 0.5, %v2280_v60  ;;  %v2303_v59 = vpop.f32.mrf.mxu3  ;;  %v2435_v9 = vld [vmem:[#allocation2 + $0x60] sm:$0x3] }
 0x481   :  { %v2843_v61 = vpop.eup %2842  ;;  %v2351_v62 = vmul.f32 0.5, %v2841_v56  ;;  %v2316_v63 = vmul.f32 0.5, %v2303_v59  ;;  %2451 = vst [vmem:[%s3864_s3 + $0x60] sm:$0x3] %v2435_v9  ;;  %v2436_v4 = vld [vmem:[#allocation2 + $0x70] sm:$0x3] }
 0x482   :  { %v2352_v0 = vmul.f32 0.5, %v2843_v61  ;;  %2844 = vtanh.f32 %v2315_v57  ;;  %2452 = vst [vmem:[%s3864_s3 + $0x68] sm:$0x3] %v2436_v4 }
 0x483   :  { %v2367_v1 = vadd.f32 0.5, %v2351_v62  ;;  %2846 = vtanh.f32 %v2316_v63 }
 0x484   :  { %v2368_v3 = vadd.f32 0.5, %v2352_v0 }
 0x485   :  { %v2401_v5 = vsel %vm3793_vm3, %v2367_v1, 0.0 }
 0x486   :  { %2417 = vst [vmem:[#allocation2 + $0x10] sm:$0x3] %v2401_v5  ;;  %v2402_v6 = vsel %vm3797_vm4, %v2368_v3, 0.0 }
 0x487   :  { %2418 = vst [vmem:[#allocation2 + $0x38] sm:$0x3] %v2402_v6  ;;  %v2283_v8 = vpop.f32.mrf.mxu2 }
 0x488   :  { %v2845_v11 = vpop.eup %2844  ;;  %v2323_v14 = vmul.f32 0.5, %v2283_v8  ;;  %v2306_v15 = vpop.f32.mrf.mxu3 }
 0x489   :  { %v2847_v16 = vpop.eup %2846  ;;  %v2347_v17 = vmul.f32 0.5, %v2845_v11  ;;  %v2324_v18 = vmul.f32 0.5, %v2306_v15 }
 0x48a   :  { %v2348_v20 = vmul.f32 0.5, %v2847_v16  ;;  %2848 = vtanh.f32 %v2323_v14 }
 0x48b   :  { %v2363_v22 = vadd.f32 0.5, %v2347_v17  ;;  %2850 = vtanh.f32 %v2324_v18 }
 0x48c   :  { %v2364_v24 = vadd.f32 0.5, %v2348_v20 }
 0x48d   :  { %v2433_v26 = vld [vmem:[#allocation2 + $0x10] sm:$0x3]  ;;  %v2397_v10 = vsel %vm3827_vm5, %v2363_v22, 0.0 }
 0x48e   :  { %2449 = vst [vmem:[%s3864_s3 + $0x50] sm:$0x3] %v2433_v26  ;;  %v2434_v27 = vld [vmem:[#allocation2 + $0x38] sm:$0x3]  ;;  %v2398_v28 = vsel %vm3831_vm6, %v2364_v24, 0.0 }
 0x48f   :  { %2450 = vst [vmem:[%s3864_s3 + $0x58] sm:$0x3] %v2434_v27 }
 0x490   :  { %v2849_v29 = vpop.eup %2848  ;;  %2445 = vst [vmem:[%s3864_s3 + $0x30] sm:$0xff] %v2397_v10 }
 0x491   :  { %v2851_v30 = vpop.eup %2850  ;;  %v2355_v32 = vmul.f32 0.5, %v2849_v29  ;;  %2446 = vst [vmem:[%s3864_s3 + $0x38] sm:$0xff] %v2398_v28 }
 0x492   :  { %v2356_v31 = vmul.f32 0.5, %v2851_v30 }
 0x493   :  { %v2371_v34 = vadd.f32 0.5, %v2355_v32 }
 0x494   :  { %v2372_v58 = vadd.f32 0.5, %v2356_v31 }
 0x495   :  { %v2405_v35 = vsel %vm3827_vm5, %v2371_v34, 0.0 }
 0x496   :  { %2421 = vst [vmem:[#allocation2 + $0x78] sm:$0x3] %v2405_v35  ;;  %v2406_v36 = vsel %vm3831_vm6, %v2372_v58, 0.0 }
 0x497   :  { %2422 = vst [vmem:[#allocation2 + $0x28] sm:$0x3] %v2406_v36 }
 0x49d   :  { %v2437_v37 = vld [vmem:[#allocation2 + $0x78] sm:$0x3] }
 0x49e   :  { %2453 = vst [vmem:[%s3864_s3 + $0x70] sm:$0x3] %v2437_v37  ;;  %v2438_v38 = vld [vmem:[#allocation2 + $0x28] sm:$0x3] }
 0x49f   :  { %2454 = vst [vmem:[%s3864_s3 + $0x78] sm:$0x3] %v2438_v38 }

</bundles_post_ra>
